<compile_context>
chip_gen: v7x
topology: tpu7x:2x2x1
jax: 0.10.0
libtpu: 0.0.40
codegen_flags: <defaults>
</compile_context>

<pallas_src>
import functools

import jax
import jax.numpy as jnp
from jax import lax
from jax.experimental import pallas as pl
from jax.experimental.pallas import tpu as pltpu

C_IN, LEN_IN = 3, 256          # input must be (B, 3, 256) so that fc input = 64*32
K1, C1 = 5, 32
K2, C2 = 3, 32
L2 = 64                        # conv2 output length -> flatten size = C2 * L2 = 2048
WIN = C_IN * 9                 # 27 unique padded-signal values per conv2 position
FC_OUT = 128
L_TILE = 16                    # conv2 positions handled per grid step
N_LBLK = L2 // L_TILE          # 4


def _round_up(n, m):
    return ((n + m - 1) // m) * m


# -----------------------------------------------------------------------------
# Deterministic orthogonal init (same semantics as torch.nn.init.orthogonal_)
# -----------------------------------------------------------------------------
def orthogonal_init(key, shape, gain=1.0, dtype=jnp.float32):
    rows, cols = shape
    n_big, n_small = max(rows, cols), min(rows, cols)
    a = jax.random.normal(key, (n_big, n_small), dtype=jnp.float32)
    q, r = jnp.linalg.qr(a)
    d = jnp.diagonal(r)
    d = jnp.where(d == 0, 1.0, jnp.sign(d))
    q = q * d[None, :]
    if rows < cols:
        q = q.T
    return (gain * q[:rows, :cols]).astype(dtype)


# -----------------------------------------------------------------------------
# Pallas kernel
# -----------------------------------------------------------------------------
def _polar_encoder_kernel(win_ref,              # (L_TILE, tb, 27) signal windows
                          w1_ref, b1_ref,       # (27, 96), (1, 96) block-diag conv1
                          w2_ref, b2_ref,       # (96, 32), (1, 32) stacked conv2
                          wfc_ref, bfc_ref,     # (L_TILE*32, 128), (1, 128)
                          o_ref):               # (tb, 128) f32, doubles as accumulator
    t = pl.program_id(1)
    n_t = pl.num_programs(1)

    @pl.when(t == 0)
    def _():
        o_ref[...] = jnp.zeros_like(o_ref)

    w1 = w1_ref[...]
    b1 = b1_ref[...]
    w2 = w2_ref[...]
    b2 = b2_ref[...]

    gs = []
    for l in range(L_TILE):   # static unroll over the positions of this L-block
        # conv1 for the three h1 columns (2p-1, 2p, 2p+1) feeding conv2 output
        # position p = t*L_TILE + l, as one block-diagonal matmul on the window.
        h = jnp.tanh(jnp.dot(win_ref[l], w1, preferred_element_type=jnp.float32) + b1)
        # conv2 zero-padding: h1[-1] (cols 0:32) exists only at global pos 0,
        # h1[127] (cols 64:96) only at global pos 63 -> mask after the tanh.
        if l == 0:
            cols = lax.broadcasted_iota(jnp.int32, (1, K2 * C1), 1)
            h = h * jnp.where(cols < C1, (t != 0).astype(jnp.float32), 1.0)
        if l == L_TILE - 1:
            cols = lax.broadcasted_iota(jnp.int32, (1, K2 * C1), 1)
            h = h * jnp.where(cols >= 2 * C1, (t != n_t - 1).astype(jnp.float32), 1.0)
        z = jnp.dot(h, w2, preferred_element_type=jnp.float32) + b2
        gs.append(jnp.tanh(jnp.tanh(z)))          # tanh(conv2) then tanh(flatten)

    # fc contribution of this L-block: one fat (tb, 512) x (512, 128) matmul.
    g = jnp.concatenate(gs, axis=-1)              # (tb, L_TILE*32), position-major
    o_ref[...] += jnp.dot(g, wfc_ref[...], preferred_element_type=jnp.float32)

    @pl.when(t == n_t - 1)
    def _():
        o_ref[...] = jnp.tanh(o_ref[...] + bfc_ref[...])


# -----------------------------------------------------------------------------
# Wrapper: window construction + weight re-layout + pallas_call
# -----------------------------------------------------------------------------
def _build_windows(x):
    """x: (Bp, 3, 256) -> (N_LBLK, L_TILE, Bp, 27).
    window[t, l, b, ci*9 + p] = xp[b, ci, 4*(t*L_TILE+l) - 2 + p]  (xp = conv1's
    pad-1 signal; values feeding only the phantom h1[-1]/h1[127] are masked in
    the kernel so their content is irrelevant)."""
    B = x.shape[0]
    xpad = jnp.pad(x, ((0, 0), (0, 0), (3, 5)))                     # xpad[s] = x[s-3]
    cols = [xpad[:, :, p: p + 4 * (L2 - 1) + 1: 4] for p in range(9)]   # (B,3,64) each
    w = jnp.stack(cols, axis=-1)                                    # (B, 3, 64, 9)
    w = jnp.transpose(w, (2, 0, 1, 3))                              # (64, B, 3, 9)
    return w.reshape(L2, B, WIN).reshape(N_LBLK, L_TILE, B, WIN)


def _prepare_weights(w1, b1, w2, b2, wfc, bfc):
    # conv1 -> block-diagonal (27, 96): output column tap*32+co reads window row
    # ci*9 + 2*tap + k with weight w1[co, ci, k].
    w1_ck = jnp.transpose(w1, (1, 2, 0))                            # (ci, k, co)
    blocks = [jnp.pad(w1_ck, ((0, 0), (2 * tap, 4 - 2 * tap), (0, 0))).reshape(WIN, C1)
              for tap in range(K2)]
    w1_win = jnp.concatenate(blocks, axis=1)                        # (27, 96)
    b1_3 = jnp.tile(b1, (K2,)).reshape(1, K2 * C1)                  # (1, 96)
    # conv2 -> vstacked (96, 32): row tap*32+ci carries w2[co, ci, tap].
    w2_stk = jnp.transpose(w2, (2, 1, 0)).reshape(K2 * C1, C2)      # (96, 32)
    b2_r = b2.reshape(1, C2)
    # fc -> (N_LBLK, L_TILE*32, 128): row l_local*32+c of block t is the torch
    # flatten index c*64 + (t*L_TILE + l_local), matching the kernel's concat order.
    wfc_lc = jnp.transpose(wfc.reshape(FC_OUT, C2, L2), (2, 1, 0))  # (64, 32, 128)
    wfc_blk = wfc_lc.reshape(N_LBLK, L_TILE * C2, FC_OUT)
    bfc_r = bfc.reshape(1, FC_OUT)
    return w1_win, b1_3, w2_stk, b2_r, wfc_blk, bfc_r


@functools.partial(jax.jit, static_argnames=("tile_b",))
def polar_encoder_forward(raw, w1, b1, w2, b2, wfc, bfc, *, tile_b=512):
    """raw: (B, 3, 256) f32.  Weights in PyTorch layout:
       w1 (32,3,5), b1 (32,), w2 (32,32,3), b2 (32,), wfc (128,2048), bfc (128,)."""
    B = raw.shape[0]
    assert raw.shape[1:] == (C_IN, LEN_IN)

    # Batch tiling: multiple of 8, capped at 1024 (VMEM), and >=2 tiles along the
    # "parallel" axis when the batch allows (v7x megacore).
    Bp8 = _round_up(B, 8)
    tb = max(8, (min(int(tile_b), 1024, Bp8) // 8) * 8)
    if Bp8 >= 16 and Bp8 <= tb:
        tb = _round_up((Bp8 + 1) // 2, 8)
    Bp = _round_up(B, tb)
    x = jnp.pad(raw, ((0, Bp - B), (0, 0), (0, 0))) if Bp != B else raw
    x = x.astype(jnp.float32)

    windows = _build_windows(x)
    w1_win, b1_3, w2_stk, b2_r, wfc_blk, bfc_r = _prepare_weights(w1, b1, w2, b2, wfc, bfc)

    const = lambda shape: pl.BlockSpec(shape, lambda i, t, _s=shape: (0,) * len(_s))

    out = pl.pallas_call(
        _polar_encoder_kernel,
        out_shape=jax.ShapeDtypeStruct((Bp, FC_OUT), jnp.float32),
        grid_spec=pltpu.PrefetchScalarGridSpec(
            num_scalar_prefetch=0,
            grid=(Bp // tb, N_LBLK),
            in_specs=[
                pl.BlockSpec((None, L_TILE, tb, WIN), lambda i, t: (t, 0, i, 0)),
                const((WIN, K2 * C1)), const((1, K2 * C1)),
                const((K2 * C1, C2)), const((1, C2)),
                pl.BlockSpec((None, L_TILE * C2, FC_OUT), lambda i, t: (t, 0, 0)),
                const((1, FC_OUT)),
            ],
            out_specs=pl.BlockSpec((tb, FC_OUT), lambda i, t: (i, 0)),
        ),
        compiler_params=pltpu.CompilerParams(
            dimension_semantics=("parallel", "arbitrary"),
            vmem_limit_bytes=32 * 1024 * 1024,
        ),
    )(windows, w1_win, b1_3, w2_stk, b2_r, wfc_blk, bfc_r)
    return out[:B].astype(raw.dtype)


# -----------------------------------------------------------------------------
# Pure-JAX reference for correctness check
# -----------------------------------------------------------------------------
def polar_encoder_ref(raw, w1, b1, w2, b2, wfc, bfc):
    dn = ('NCH', 'OIH', 'NCH')
    y = jax.lax.conv_general_dilated(raw, w1, window_strides=(2,), padding=[(1, 1)],
                                     dimension_numbers=dn)
    y = jnp.tanh(y + b1[None, :, None])
    y = jax.lax.conv_general_dilated(y, w2, window_strides=(2,), padding=[(1, 1)],
                                     dimension_numbers=dn)
    y = jnp.tanh(y + b2[None, :, None])
    flat = jnp.tanh(y.reshape(y.shape[0], -1))   # torch Flatten: channel-major
    return jnp.tanh(flat @ wfc.T + bfc)


if __name__ == "__main__":
    key = jax.random.PRNGKey(0)
    k_x, k_w1, k_b1, k_w2, k_b2, k_fc = jax.random.split(key, 6)

    B = 8
    raw = jax.random.normal(k_x, (B, C_IN, LEN_IN), dtype=jnp.float32)

    # conv params (non-zero biases so the conv2 boundary-padding path is exercised)
    w1 = 0.2 * jax.random.normal(k_w1, (C1, C_IN, K1), dtype=jnp.float32)
    b1 = 0.1 * jax.random.normal(k_b1, (C1,), dtype=jnp.float32)
    w2 = 0.2 * jax.random.normal(k_w2, (C2, C1, K2), dtype=jnp.float32)
    b2 = 0.1 * jax.random.normal(k_b2, (C2,), dtype=jnp.float32)
    # fc: orthogonal weight, zero bias (as in orthogonal_init(self.fc))
    wfc = orthogonal_init(k_fc, (FC_OUT, C2 * L2))
    bfc = jnp.zeros((FC_OUT,), jnp.float32)

    out = polar_encoder_forward(raw, w1, b1, w2, b2, wfc, bfc)
    out = jax.block_until_ready(out)

    ref = polar_encoder_ref(raw, w1, b1, w2, b2, wfc, bfc)
    assert out.shape == (B, FC_OUT)
    assert jnp.allclose(out, ref, atol=5e-4, rtol=5e-4), float(jnp.max(jnp.abs(out - ref)))

    print("KERNEL_OK")
</pallas_src>

<mosaic_0001>
module attributes {stable_mosaic.version = 11 : i64} {
  func.func @_polar_encoder_kernel(%arg0: i32, %arg1: i32, %arg2: memref<1x16x8x27xf32, #tpu.memory_space<vmem>>, %arg3: memref<27x96xf32, #tpu.memory_space<vmem>>, %arg4: memref<1x96xf32, #tpu.memory_space<vmem>>, %arg5: memref<96x32xf32, #tpu.memory_space<vmem>>, %arg6: memref<1x32xf32, #tpu.memory_space<vmem>>, %arg7: memref<1x512x128xf32, #tpu.memory_space<vmem>>, %arg8: memref<1x128xf32, #tpu.memory_space<vmem>>, %arg9: memref<8x128xf32, #tpu.memory_space<vmem>>) attributes {dimension_semantics = [#tpu.dimension_semantics<parallel>, #tpu.dimension_semantics<arbitrary>], iteration_bounds = array<i64: 1, 4>, scalar_prefetch = 0 : i64, scratch_operands = 0 : i64, tpu.core_type = #tpu.core_type<tc>, window_params = [{transform_indices = @transform_0, window_bounds = array<i64: 1, 16, 8, 27>}, {pipeline_mode = #tpu.pipeline_mode<synchronous>, transform_indices = @transform_1, window_bounds = array<i64: 27, 96>}, {pipeline_mode = #tpu.pipeline_mode<synchronous>, transform_indices = @transform_2, window_bounds = array<i64: 1, 96>}, {pipeline_mode = #tpu.pipeline_mode<synchronous>, transform_indices = @transform_3, window_bounds = array<i64: 96, 32>}, {pipeline_mode = #tpu.pipeline_mode<synchronous>, transform_indices = @transform_4, window_bounds = array<i64: 1, 32>}, {transform_indices = @transform_5, window_bounds = array<i64: 1, 512, 128>}, {pipeline_mode = #tpu.pipeline_mode<synchronous>, transform_indices = @transform_6, window_bounds = array<i64: 1, 128>}, {transform_indices = @transform_7, window_bounds = array<i64: 8, 128>}]} {
    %c0_i32 = arith.constant 0 : i32
    %0 = arith.cmpi eq, %arg1, %c0_i32 : i32
    %1 = arith.extui %0 : i1 to i32
    %c0_i32_0 = arith.constant 0 : i32
    %2 = arith.cmpi ne, %1, %c0_i32_0 : i32
    scf.if %2 {
      %cst_101 = arith.constant 0.000000e+00 : f32
      %215 = vector.broadcast %cst_101 : f32 to vector<8x128xf32>
      %c0_102 = arith.constant 0 : index
      %c0_103 = arith.constant 0 : index
      %216 = vector.load %arg9[%c0_102, %c0_103] : memref<8x128xf32, #tpu.memory_space<vmem>>, vector<8x128xf32>
      tpu.vector_store %arg9[%c0_102, %c0_103], %215 {strides = array<i32>} : memref<8x128xf32, #tpu.memory_space<vmem>>, vector<8x128xf32>,
    } else {
    }
    %c0 = arith.constant 0 : index
    %c0_1 = arith.constant 0 : index
    %3 = vector.load %arg3[%c0, %c0_1] : memref<27x96xf32, #tpu.memory_space<vmem>>, vector<27x96xf32>
    %c0_2 = arith.constant 0 : index
    %c0_3 = arith.constant 0 : index
    %4 = vector.load %arg4[%c0_2, %c0_3] : memref<1x96xf32, #tpu.memory_space<vmem>>, vector<1x96xf32>
    %c0_4 = arith.constant 0 : index
    %c0_5 = arith.constant 0 : index
    %5 = vector.load %arg5[%c0_4, %c0_5] : memref<96x32xf32, #tpu.memory_space<vmem>>, vector<96x32xf32>
    %c0_6 = arith.constant 0 : index
    %c0_7 = arith.constant 0 : index
    %6 = vector.load %arg6[%c0_6, %c0_7] : memref<1x32xf32, #tpu.memory_space<vmem>>, vector<1x32xf32>
    %c0_8 = arith.constant 0 : index
    %c0_9 = arith.constant 0 : index
    %c0_10 = arith.constant 0 : index
    %c0_11 = arith.constant 0 : index
    %7 = vector.load %arg2[%c0_8, %c0_9, %c0_10, %c0_11] : memref<1x16x8x27xf32, #tpu.memory_space<vmem>>, vector<1x1x8x27xf32>
    %8 = vector.shape_cast %7 : vector<1x1x8x27xf32> to vector<8x27xf32>
    %cst = arith.constant dense<0.000000e+00> : vector<8x96xf32>
    %9 = tpu.matmul %8, %3, %cst {dimension_numbers = #tpu.dot_dimension_numbers<[1], [0], [0], [1], [0, 0, 1, 1], [], []>} : vector<8x27xf32>, vector<27x96xf32>, vector<8x96xf32> -> vector<8x96xf32>
    %10 = vector.broadcast %4 : vector<1x96xf32> to vector<8x96xf32>
    %11 = arith.addf %9, %10 : vector<8x96xf32>
    %12 = math.tanh %11 : vector<8x96xf32>
    %13 = tpu.iota {dimensions = array<i32: 1>} : vector<1x96xi32>
    %c32_i32 = arith.constant 32 : i32
    %14 = vector.broadcast %c32_i32 : i32 to vector<1x96xi32>
    %15 = arith.cmpi slt, %13, %14 : vector<1x96xi32>
    %c0_i32_12 = arith.constant 0 : i32
    %16 = arith.cmpi ne, %arg1, %c0_i32_12 : i32
    %17 = arith.extui %16 : i1 to i32
    %18 = arith.sitofp %17 : i32 to f32
    %cst_13 = arith.constant 1.000000e+00 : f32
    %19 = vector.broadcast %18 : f32 to vector<1x96xf32>
    %20 = vector.broadcast %cst_13 : f32 to vector<1x96xf32>
    %21 = arith.select %15, %19, %20 : vector<1x96xi1>, vector<1x96xf32>
    %22 = vector.broadcast %21 : vector<1x96xf32> to vector<8x96xf32>
    %23 = arith.mulf %12, %22 : vector<8x96xf32>
    %cst_14 = arith.constant dense<0.000000e+00> : vector<8x32xf32>
    %24 = tpu.matmul %23, %5, %cst_14 {dimension_numbers = #tpu.dot_dimension_numbers<[1], [0], [0], [1], [0, 0, 1, 1], [], []>} : vector<8x96xf32>, vector<96x32xf32>, vector<8x32xf32> -> vector<8x32xf32>
    %25 = vector.broadcast %6 : vector<1x32xf32> to vector<8x32xf32>
    %26 = arith.addf %24, %25 : vector<8x32xf32>
    %27 = math.tanh %26 : vector<8x32xf32>
    %28 = math.tanh %27 : vector<8x32xf32>
    %c0_15 = arith.constant 0 : index
    %c1 = arith.constant 1 : index
    %c0_16 = arith.constant 0 : index
    %c0_17 = arith.constant 0 : index
    %29 = vector.load %arg2[%c0_15, %c1, %c0_16, %c0_17] : memref<1x16x8x27xf32, #tpu.memory_space<vmem>>, vector<1x1x8x27xf32>
    %30 = vector.shape_cast %29 : vector<1x1x8x27xf32> to vector<8x27xf32>
    %cst_18 = arith.constant dense<0.000000e+00> : vector<8x96xf32>
    %31 = tpu.matmul %30, %3, %cst_18 {dimension_numbers = #tpu.dot_dimension_numbers<[1], [0], [0], [1], [0, 0, 1, 1], [], []>} : vector<8x27xf32>, vector<27x96xf32>, vector<8x96xf32> -> vector<8x96xf32>
    %32 = vector.broadcast %4 : vector<1x96xf32> to vector<8x96xf32>
    %33 = arith.addf %31, %32 : vector<8x96xf32>
    %34 = math.tanh %33 : vector<8x96xf32>
    %cst_19 = arith.constant dense<0.000000e+00> : vector<8x32xf32>
    %35 = tpu.matmul %34, %5, %cst_19 {dimension_numbers = #tpu.dot_dimension_numbers<[1], [0], [0], [1], [0, 0, 1, 1], [], []>} : vector<8x96xf32>, vector<96x32xf32>, vector<8x32xf32> -> vector<8x32xf32>
    %36 = vector.broadcast %6 : vector<1x32xf32> to vector<8x32xf32>
    %37 = arith.addf %35, %36 : vector<8x32xf32>
    %38 = math.tanh %37 : vector<8x32xf32>
    %39 = math.tanh %38 : vector<8x32xf32>
    %c0_20 = arith.constant 0 : index
    %c2 = arith.constant 2 : index
    %c0_21 = arith.constant 0 : index
    %c0_22 = arith.constant 0 : index
    %40 = vector.load %arg2[%c0_20, %c2, %c0_21, %c0_22] : memref<1x16x8x27xf32, #tpu.memory_space<vmem>>, vector<1x1x8x27xf32>
    %41 = vector.shape_cast %40 : vector<1x1x8x27xf32> to vector<8x27xf32>
    %cst_23 = arith.constant dense<0.000000e+00> : vector<8x96xf32>
    %42 = tpu.matmul %41, %3, %cst_23 {dimension_numbers = #tpu.dot_dimension_numbers<[1], [0], [0], [1], [0, 0, 1, 1], [], []>} : vector<8x27xf32>, vector<27x96xf32>, vector<8x96xf32> -> vector<8x96xf32>
    %43 = vector.broadcast %4 : vector<1x96xf32> to vector<8x96xf32>
    %44 = arith.addf %42, %43 : vector<8x96xf32>
    %45 = math.tanh %44 : vector<8x96xf32>
    %cst_24 = arith.constant dense<0.000000e+00> : vector<8x32xf32>
    %46 = tpu.matmul %45, %5, %cst_24 {dimension_numbers = #tpu.dot_dimension_numbers<[1], [0], [0], [1], [0, 0, 1, 1], [], []>} : vector<8x96xf32>, vector<96x32xf32>, vector<8x32xf32> -> vector<8x32xf32>
    %47 = vector.broadcast %6 : vector<1x32xf32> to vector<8x32xf32>
    %48 = arith.addf %46, %47 : vector<8x32xf32>
    %49 = math.tanh %48 : vector<8x32xf32>
    %50 = math.tanh %49 : vector<8x32xf32>
    %c0_25 = arith.constant 0 : index
    %c3 = arith.constant 3 : index
    %c0_26 = arith.constant 0 : index
    %c0_27 = arith.constant 0 : index
    %51 = vector.load %arg2[%c0_25, %c3, %c0_26, %c0_27] : memref<1x16x8x27xf32, #tpu.memory_space<vmem>>, vector<1x1x8x27xf32>
    %52 = vector.shape_cast %51 : vector<1x1x8x27xf32> to vector<8x27xf32>
    %cst_28 = arith.constant dense<0.000000e+00> : vector<8x96xf32>
    %53 = tpu.matmul %52, %3, %cst_28 {dimension_numbers = #tpu.dot_dimension_numbers<[1], [0], [0], [1], [0, 0, 1, 1], [], []>} : vector<8x27xf32>, vector<27x96xf32>, vector<8x96xf32> -> vector<8x96xf32>
    %54 = vector.broadcast %4 : vector<1x96xf32> to vector<8x96xf32>
    %55 = arith.addf %53, %54 : vector<8x96xf32>
    %56 = math.tanh %55 : vector<8x96xf32>
    %cst_29 = arith.constant dense<0.000000e+00> : vector<8x32xf32>
    %57 = tpu.matmul %56, %5, %cst_29 {dimension_numbers = #tpu.dot_dimension_numbers<[1], [0], [0], [1], [0, 0, 1, 1], [], []>} : vector<8x96xf32>, vector<96x32xf32>, vector<8x32xf32> -> vector<8x32xf32>
    %58 = vector.broadcast %6 : vector<1x32xf32> to vector<8x32xf32>
    %59 = arith.addf %57, %58 : vector<8x32xf32>
    %60 = math.tanh %59 : vector<8x32xf32>
    %61 = math.tanh %60 : vector<8x32xf32>
    %c0_30 = arith.constant 0 : index
    %c4 = arith.constant 4 : index
    %c0_31 = arith.constant 0 : index
    %c0_32 = arith.constant 0 : index
    %62 = vector.load %arg2[%c0_30, %c4, %c0_31, %c0_32] : memref<1x16x8x27xf32, #tpu.memory_space<vmem>>, vector<1x1x8x27xf32>
    %63 = vector.shape_cast %62 : vector<1x1x8x27xf32> to vector<8x27xf32>
    %cst_33 = arith.constant dense<0.000000e+00> : vector<8x96xf32>
    %64 = tpu.matmul %63, %3, %cst_33 {dimension_numbers = #tpu.dot_dimension_numbers<[1], [0], [0], [1], [0, 0, 1, 1], [], []>} : vector<8x27xf32>, vector<27x96xf32>, vector<8x96xf32> -> vector<8x96xf32>
    %65 = vector.broadcast %4 : vector<1x96xf32> to vector<8x96xf32>
    %66 = arith.addf %64, %65 : vector<8x96xf32>
    %67 = math.tanh %66 : vector<8x96xf32>
    %cst_34 = arith.constant dense<0.000000e+00> : vector<8x32xf32>
    %68 = tpu.matmul %67, %5, %cst_34 {dimension_numbers = #tpu.dot_dimension_numbers<[1], [0], [0], [1], [0, 0, 1, 1], [], []>} : vector<8x96xf32>, vector<96x32xf32>, vector<8x32xf32> -> vector<8x32xf32>
    %69 = vector.broadcast %6 : vector<1x32xf32> to vector<8x32xf32>
    %70 = arith.addf %68, %69 : vector<8x32xf32>
    %71 = math.tanh %70 : vector<8x32xf32>
    %72 = math.tanh %71 : vector<8x32xf32>
    %c0_35 = arith.constant 0 : index
    %c5 = arith.constant 5 : index
    %c0_36 = arith.constant 0 : index
    %c0_37 = arith.constant 0 : index
    %73 = vector.load %arg2[%c0_35, %c5, %c0_36, %c0_37] : memref<1x16x8x27xf32, #tpu.memory_space<vmem>>, vector<1x1x8x27xf32>
    %74 = vector.shape_cast %73 : vector<1x1x8x27xf32> to vector<8x27xf32>
    %cst_38 = arith.constant dense<0.000000e+00> : vector<8x96xf32>
    %75 = tpu.matmul %74, %3, %cst_38 {dimension_numbers = #tpu.dot_dimension_numbers<[1], [0], [0], [1], [0, 0, 1, 1], [], []>} : vector<8x27xf32>, vector<27x96xf32>, vector<8x96xf32> -> vector<8x96xf32>
    %76 = vector.broadcast %4 : vector<1x96xf32> to vector<8x96xf32>
    %77 = arith.addf %75, %76 : vector<8x96xf32>
    %78 = math.tanh %77 : vector<8x96xf32>
    %cst_39 = arith.constant dense<0.000000e+00> : vector<8x32xf32>
    %79 = tpu.matmul %78, %5, %cst_39 {dimension_numbers = #tpu.dot_dimension_numbers<[1], [0], [0], [1], [0, 0, 1, 1], [], []>} : vector<8x96xf32>, vector<96x32xf32>, vector<8x32xf32> -> vector<8x32xf32>
    %80 = vector.broadcast %6 : vector<1x32xf32> to vector<8x32xf32>
    %81 = arith.addf %79, %80 : vector<8x32xf32>
    %82 = math.tanh %81 : vector<8x32xf32>
    %83 = math.tanh %82 : vector<8x32xf32>
    %c0_40 = arith.constant 0 : index
    %c6 = arith.constant 6 : index
    %c0_41 = arith.constant 0 : index
    %c0_42 = arith.constant 0 : index
    %84 = vector.load %arg2[%c0_40, %c6, %c0_41, %c0_42] : memref<1x16x8x27xf32, #tpu.memory_space<vmem>>, vector<1x1x8x27xf32>
    %85 = vector.shape_cast %84 : vector<1x1x8x27xf32> to vector<8x27xf32>
    %cst_43 = arith.constant dense<0.000000e+00> : vector<8x96xf32>
    %86 = tpu.matmul %85, %3, %cst_43 {dimension_numbers = #tpu.dot_dimension_numbers<[1], [0], [0], [1], [0, 0, 1, 1], [], []>} : vector<8x27xf32>, vector<27x96xf32>, vector<8x96xf32> -> vector<8x96xf32>
    %87 = vector.broadcast %4 : vector<1x96xf32> to vector<8x96xf32>
    %88 = arith.addf %86, %87 : vector<8x96xf32>
    %89 = math.tanh %88 : vector<8x96xf32>
    %cst_44 = arith.constant dense<0.000000e+00> : vector<8x32xf32>
    %90 = tpu.matmul %89, %5, %cst_44 {dimension_numbers = #tpu.dot_dimension_numbers<[1], [0], [0], [1], [0, 0, 1, 1], [], []>} : vector<8x96xf32>, vector<96x32xf32>, vector<8x32xf32> -> vector<8x32xf32>
    %91 = vector.broadcast %6 : vector<1x32xf32> to vector<8x32xf32>
    %92 = arith.addf %90, %91 : vector<8x32xf32>
    %93 = math.tanh %92 : vector<8x32xf32>
    %94 = math.tanh %93 : vector<8x32xf32>
    %c0_45 = arith.constant 0 : index
    %c7 = arith.constant 7 : index
    %c0_46 = arith.constant 0 : index
    %c0_47 = arith.constant 0 : index
    %95 = vector.load %arg2[%c0_45, %c7, %c0_46, %c0_47] : memref<1x16x8x27xf32, #tpu.memory_space<vmem>>, vector<1x1x8x27xf32>
    %96 = vector.shape_cast %95 : vector<1x1x8x27xf32> to vector<8x27xf32>
    %cst_48 = arith.constant dense<0.000000e+00> : vector<8x96xf32>
    %97 = tpu.matmul %96, %3, %cst_48 {dimension_numbers = #tpu.dot_dimension_numbers<[1], [0], [0], [1], [0, 0, 1, 1], [], []>} : vector<8x27xf32>, vector<27x96xf32>, vector<8x96xf32> -> vector<8x96xf32>
    %98 = vector.broadcast %4 : vector<1x96xf32> to vector<8x96xf32>
    %99 = arith.addf %97, %98 : vector<8x96xf32>
    %100 = math.tanh %99 : vector<8x96xf32>
    %cst_49 = arith.constant dense<0.000000e+00> : vector<8x32xf32>
    %101 = tpu.matmul %100, %5, %cst_49 {dimension_numbers = #tpu.dot_dimension_numbers<[1], [0], [0], [1], [0, 0, 1, 1], [], []>} : vector<8x96xf32>, vector<96x32xf32>, vector<8x32xf32> -> vector<8x32xf32>
    %102 = vector.broadcast %6 : vector<1x32xf32> to vector<8x32xf32>
    %103 = arith.addf %101, %102 : vector<8x32xf32>
    %104 = math.tanh %103 : vector<8x32xf32>
    %105 = math.tanh %104 : vector<8x32xf32>
    %c0_50 = arith.constant 0 : index
    %c8 = arith.constant 8 : index
    %c0_51 = arith.constant 0 : index
    %c0_52 = arith.constant 0 : index
    %106 = vector.load %arg2[%c0_50, %c8, %c0_51, %c0_52] : memref<1x16x8x27xf32, #tpu.memory_space<vmem>>, vector<1x1x8x27xf32>
    %107 = vector.shape_cast %106 : vector<1x1x8x27xf32> to vector<8x27xf32>
    %cst_53 = arith.constant dense<0.000000e+00> : vector<8x96xf32>
    %108 = tpu.matmul %107, %3, %cst_53 {dimension_numbers = #tpu.dot_dimension_numbers<[1], [0], [0], [1], [0, 0, 1, 1], [], []>} : vector<8x27xf32>, vector<27x96xf32>, vector<8x96xf32> -> vector<8x96xf32>
    %109 = vector.broadcast %4 : vector<1x96xf32> to vector<8x96xf32>
    %110 = arith.addf %108, %109 : vector<8x96xf32>
    %111 = math.tanh %110 : vector<8x96xf32>
    %cst_54 = arith.constant dense<0.000000e+00> : vector<8x32xf32>
    %112 = tpu.matmul %111, %5, %cst_54 {dimension_numbers = #tpu.dot_dimension_numbers<[1], [0], [0], [1], [0, 0, 1, 1], [], []>} : vector<8x96xf32>, vector<96x32xf32>, vector<8x32xf32> -> vector<8x32xf32>
    %113 = vector.broadcast %6 : vector<1x32xf32> to vector<8x32xf32>
    %114 = arith.addf %112, %113 : vector<8x32xf32>
    %115 = math.tanh %114 : vector<8x32xf32>
    %116 = math.tanh %115 : vector<8x32xf32>
    %c0_55 = arith.constant 0 : index
    %c9 = arith.constant 9 : index
    %c0_56 = arith.constant 0 : index
    %c0_57 = arith.constant 0 : index
    %117 = vector.load %arg2[%c0_55, %c9, %c0_56, %c0_57] : memref<1x16x8x27xf32, #tpu.memory_space<vmem>>, vector<1x1x8x27xf32>
    %118 = vector.shape_cast %117 : vector<1x1x8x27xf32> to vector<8x27xf32>
    %cst_58 = arith.constant dense<0.000000e+00> : vector<8x96xf32>
    %119 = tpu.matmul %118, %3, %cst_58 {dimension_numbers = #tpu.dot_dimension_numbers<[1], [0], [0], [1], [0, 0, 1, 1], [], []>} : vector<8x27xf32>, vector<27x96xf32>, vector<8x96xf32> -> vector<8x96xf32>
    %120 = vector.broadcast %4 : vector<1x96xf32> to vector<8x96xf32>
    %121 = arith.addf %119, %120 : vector<8x96xf32>
    %122 = math.tanh %121 : vector<8x96xf32>
    %cst_59 = arith.constant dense<0.000000e+00> : vector<8x32xf32>
    %123 = tpu.matmul %122, %5, %cst_59 {dimension_numbers = #tpu.dot_dimension_numbers<[1], [0], [0], [1], [0, 0, 1, 1], [], []>} : vector<8x96xf32>, vector<96x32xf32>, vector<8x32xf32> -> vector<8x32xf32>
    %124 = vector.broadcast %6 : vector<1x32xf32> to vector<8x32xf32>
    %125 = arith.addf %123, %124 : vector<8x32xf32>
    %126 = math.tanh %125 : vector<8x32xf32>
    %127 = math.tanh %126 : vector<8x32xf32>
    %c0_60 = arith.constant 0 : index
    %c10 = arith.constant 10 : index
    %c0_61 = arith.constant 0 : index
    %c0_62 = arith.constant 0 : index
    %128 = vector.load %arg2[%c0_60, %c10, %c0_61, %c0_62] : memref<1x16x8x27xf32, #tpu.memory_space<vmem>>, vector<1x1x8x27xf32>
    %129 = vector.shape_cast %128 : vector<1x1x8x27xf32> to vector<8x27xf32>
    %cst_63 = arith.constant dense<0.000000e+00> : vector<8x96xf32>
    %130 = tpu.matmul %129, %3, %cst_63 {dimension_numbers = #tpu.dot_dimension_numbers<[1], [0], [0], [1], [0, 0, 1, 1], [], []>} : vector<8x27xf32>, vector<27x96xf32>, vector<8x96xf32> -> vector<8x96xf32>
    %131 = vector.broadcast %4 : vector<1x96xf32> to vector<8x96xf32>
    %132 = arith.addf %130, %131 : vector<8x96xf32>
    %133 = math.tanh %132 : vector<8x96xf32>
    %cst_64 = arith.constant dense<0.000000e+00> : vector<8x32xf32>
    %134 = tpu.matmul %133, %5, %cst_64 {dimension_numbers = #tpu.dot_dimension_numbers<[1], [0], [0], [1], [0, 0, 1, 1], [], []>} : vector<8x96xf32>, vector<96x32xf32>, vector<8x32xf32> -> vector<8x32xf32>
    %135 = vector.broadcast %6 : vector<1x32xf32> to vector<8x32xf32>
    %136 = arith.addf %134, %135 : vector<8x32xf32>
    %137 = math.tanh %136 : vector<8x32xf32>
    %138 = math.tanh %137 : vector<8x32xf32>
    %c0_65 = arith.constant 0 : index
    %c11 = arith.constant 11 : index
    %c0_66 = arith.constant 0 : index
    %c0_67 = arith.constant 0 : index
    %139 = vector.load %arg2[%c0_65, %c11, %c0_66, %c0_67] : memref<1x16x8x27xf32, #tpu.memory_space<vmem>>, vector<1x1x8x27xf32>
    %140 = vector.shape_cast %139 : vector<1x1x8x27xf32> to vector<8x27xf32>
    %cst_68 = arith.constant dense<0.000000e+00> : vector<8x96xf32>
    %141 = tpu.matmul %140, %3, %cst_68 {dimension_numbers = #tpu.dot_dimension_numbers<[1], [0], [0], [1], [0, 0, 1, 1], [], []>} : vector<8x27xf32>, vector<27x96xf32>, vector<8x96xf32> -> vector<8x96xf32>
    %142 = vector.broadcast %4 : vector<1x96xf32> to vector<8x96xf32>
    %143 = arith.addf %141, %142 : vector<8x96xf32>
    %144 = math.tanh %143 : vector<8x96xf32>
    %cst_69 = arith.constant dense<0.000000e+00> : vector<8x32xf32>
    %145 = tpu.matmul %144, %5, %cst_69 {dimension_numbers = #tpu.dot_dimension_numbers<[1], [0], [0], [1], [0, 0, 1, 1], [], []>} : vector<8x96xf32>, vector<96x32xf32>, vector<8x32xf32> -> vector<8x32xf32>
    %146 = vector.broadcast %6 : vector<1x32xf32> to vector<8x32xf32>
    %147 = arith.addf %145, %146 : vector<8x32xf32>
    %148 = math.tanh %147 : vector<8x32xf32>
    %149 = math.tanh %148 : vector<8x32xf32>
    %c0_70 = arith.constant 0 : index
    %c12 = arith.constant 12 : index
    %c0_71 = arith.constant 0 : index
    %c0_72 = arith.constant 0 : index
    %150 = vector.load %arg2[%c0_70, %c12, %c0_71, %c0_72] : memref<1x16x8x27xf32, #tpu.memory_space<vmem>>, vector<1x1x8x27xf32>
    %151 = vector.shape_cast %150 : vector<1x1x8x27xf32> to vector<8x27xf32>
    %cst_73 = arith.constant dense<0.000000e+00> : vector<8x96xf32>
    %152 = tpu.matmul %151, %3, %cst_73 {dimension_numbers = #tpu.dot_dimension_numbers<[1], [0], [0], [1], [0, 0, 1, 1], [], []>} : vector<8x27xf32>, vector<27x96xf32>, vector<8x96xf32> -> vector<8x96xf32>
    %153 = vector.broadcast %4 : vector<1x96xf32> to vector<8x96xf32>
    %154 = arith.addf %152, %153 : vector<8x96xf32>
    %155 = math.tanh %154 : vector<8x96xf32>
    %cst_74 = arith.constant dense<0.000000e+00> : vector<8x32xf32>
    %156 = tpu.matmul %155, %5, %cst_74 {dimension_numbers = #tpu.dot_dimension_numbers<[1], [0], [0], [1], [0, 0, 1, 1], [], []>} : vector<8x96xf32>, vector<96x32xf32>, vector<8x32xf32> -> vector<8x32xf32>
    %157 = vector.broadcast %6 : vector<1x32xf32> to vector<8x32xf32>
    %158 = arith.addf %156, %157 : vector<8x32xf32>
    %159 = math.tanh %158 : vector<8x32xf32>
    %160 = math.tanh %159 : vector<8x32xf32>
    %c0_75 = arith.constant 0 : index
    %c13 = arith.constant 13 : index
    %c0_76 = arith.constant 0 : index
    %c0_77 = arith.constant 0 : index
    %161 = vector.load %arg2[%c0_75, %c13, %c0_76, %c0_77] : memref<1x16x8x27xf32, #tpu.memory_space<vmem>>, vector<1x1x8x27xf32>
    %162 = vector.shape_cast %161 : vector<1x1x8x27xf32> to vector<8x27xf32>
    %cst_78 = arith.constant dense<0.000000e+00> : vector<8x96xf32>
    %163 = tpu.matmul %162, %3, %cst_78 {dimension_numbers = #tpu.dot_dimension_numbers<[1], [0], [0], [1], [0, 0, 1, 1], [], []>} : vector<8x27xf32>, vector<27x96xf32>, vector<8x96xf32> -> vector<8x96xf32>
    %164 = vector.broadcast %4 : vector<1x96xf32> to vector<8x96xf32>
    %165 = arith.addf %163, %164 : vector<8x96xf32>
    %166 = math.tanh %165 : vector<8x96xf32>
    %cst_79 = arith.constant dense<0.000000e+00> : vector<8x32xf32>
    %167 = tpu.matmul %166, %5, %cst_79 {dimension_numbers = #tpu.dot_dimension_numbers<[1], [0], [0], [1], [0, 0, 1, 1], [], []>} : vector<8x96xf32>, vector<96x32xf32>, vector<8x32xf32> -> vector<8x32xf32>
    %168 = vector.broadcast %6 : vector<1x32xf32> to vector<8x32xf32>
    %169 = arith.addf %167, %168 : vector<8x32xf32>
    %170 = math.tanh %169 : vector<8x32xf32>
    %171 = math.tanh %170 : vector<8x32xf32>
    %c0_80 = arith.constant 0 : index
    %c14 = arith.constant 14 : index
    %c0_81 = arith.constant 0 : index
    %c0_82 = arith.constant 0 : index
    %172 = vector.load %arg2[%c0_80, %c14, %c0_81, %c0_82] : memref<1x16x8x27xf32, #tpu.memory_space<vmem>>, vector<1x1x8x27xf32>
    %173 = vector.shape_cast %172 : vector<1x1x8x27xf32> to vector<8x27xf32>
    %cst_83 = arith.constant dense<0.000000e+00> : vector<8x96xf32>
    %174 = tpu.matmul %173, %3, %cst_83 {dimension_numbers = #tpu.dot_dimension_numbers<[1], [0], [0], [1], [0, 0, 1, 1], [], []>} : vector<8x27xf32>, vector<27x96xf32>, vector<8x96xf32> -> vector<8x96xf32>
    %175 = vector.broadcast %4 : vector<1x96xf32> to vector<8x96xf32>
    %176 = arith.addf %174, %175 : vector<8x96xf32>
    %177 = math.tanh %176 : vector<8x96xf32>
    %cst_84 = arith.constant dense<0.000000e+00> : vector<8x32xf32>
    %178 = tpu.matmul %177, %5, %cst_84 {dimension_numbers = #tpu.dot_dimension_numbers<[1], [0], [0], [1], [0, 0, 1, 1], [], []>} : vector<8x96xf32>, vector<96x32xf32>, vector<8x32xf32> -> vector<8x32xf32>
    %179 = vector.broadcast %6 : vector<1x32xf32> to vector<8x32xf32>
    %180 = arith.addf %178, %179 : vector<8x32xf32>
    %181 = math.tanh %180 : vector<8x32xf32>
    %182 = math.tanh %181 : vector<8x32xf32>
    %c0_85 = arith.constant 0 : index
    %c15 = arith.constant 15 : index
    %c0_86 = arith.constant 0 : index
    %c0_87 = arith.constant 0 : index
    %183 = vector.load %arg2[%c0_85, %c15, %c0_86, %c0_87] : memref<1x16x8x27xf32, #tpu.memory_space<vmem>>, vector<1x1x8x27xf32>
    %184 = vector.shape_cast %183 : vector<1x1x8x27xf32> to vector<8x27xf32>
    %cst_88 = arith.constant dense<0.000000e+00> : vector<8x96xf32>
    %185 = tpu.matmul %184, %3, %cst_88 {dimension_numbers = #tpu.dot_dimension_numbers<[1], [0], [0], [1], [0, 0, 1, 1], [], []>} : vector<8x27xf32>, vector<27x96xf32>, vector<8x96xf32> -> vector<8x96xf32>
    %186 = vector.broadcast %4 : vector<1x96xf32> to vector<8x96xf32>
    %187 = arith.addf %185, %186 : vector<8x96xf32>
    %188 = math.tanh %187 : vector<8x96xf32>
    %189 = tpu.iota {dimensions = array<i32: 1>} : vector<1x96xi32>
    %c64_i32 = arith.constant 64 : i32
    %190 = vector.broadcast %c64_i32 : i32 to vector<1x96xi32>
    %191 = arith.cmpi sge, %189, %190 : vector<1x96xi32>
    %c3_i32 = arith.constant 3 : i32
    %192 = arith.cmpi ne, %arg1, %c3_i32 : i32
    %193 = arith.extui %192 : i1 to i32
    %194 = arith.sitofp %193 : i32 to f32
    %cst_89 = arith.constant 1.000000e+00 : f32
    %195 = vector.broadcast %194 : f32 to vector<1x96xf32>
    %196 = vector.broadcast %cst_89 : f32 to vector<1x96xf32>
    %197 = arith.select %191, %195, %196 : vector<1x96xi1>, vector<1x96xf32>
    %198 = vector.broadcast %197 : vector<1x96xf32> to vector<8x96xf32>
    %199 = arith.mulf %188, %198 : vector<8x96xf32>
    %cst_90 = arith.constant dense<0.000000e+00> : vector<8x32xf32>
    %200 = tpu.matmul %199, %5, %cst_90 {dimension_numbers = #tpu.dot_dimension_numbers<[1], [0], [0], [1], [0, 0, 1, 1], [], []>} : vector<8x96xf32>, vector<96x32xf32>, vector<8x32xf32> -> vector<8x32xf32>
    %201 = vector.broadcast %6 : vector<1x32xf32> to vector<8x32xf32>
    %202 = arith.addf %200, %201 : vector<8x32xf32>
    %203 = math.tanh %202 : vector<8x32xf32>
    %204 = math.tanh %203 : vector<8x32xf32>
    %205 = tpu.concatenate %28, %39, %50, %61, %72, %83, %94, %105, %116, %127, %138, %149, %160, %171, %182, %204 in 1 : vector<8x32xf32>, vector<8x32xf32>, vector<8x32xf32>, vector<8x32xf32>, vector<8x32xf32>, vector<8x32xf32>, vector<8x32xf32>, vector<8x32xf32>, vector<8x32xf32>, vector<8x32xf32>, vector<8x32xf32>, vector<8x32xf32>, vector<8x32xf32>, vector<8x32xf32>, vector<8x32xf32>, vector<8x32xf32> -> vector<8x512xf32>
    %c0_91 = arith.constant 0 : index
    %c0_92 = arith.constant 0 : index
    %206 = vector.load %arg9[%c0_91, %c0_92] : memref<8x128xf32, #tpu.memory_space<vmem>>, vector<8x128xf32>
    %c0_93 = arith.constant 0 : index
    %c0_94 = arith.constant 0 : index
    %c0_95 = arith.constant 0 : index
    %207 = vector.load %arg7[%c0_93, %c0_94, %c0_95] : memref<1x512x128xf32, #tpu.memory_space<vmem>>, vector<1x512x128xf32>
    %208 = vector.shape_cast %207 : vector<1x512x128xf32> to vector<512x128xf32>
    %cst_96 = arith.constant dense<0.000000e+00> : vector<8x128xf32>
    %209 = tpu.matmul %205, %208, %cst_96 {dimension_numbers = #tpu.dot_dimension_numbers<[1], [0], [0], [1], [0, 0, 1, 1], [], []>} : vector<8x512xf32>, vector<512x128xf32>, vector<8x128xf32> -> vector<8x128xf32>
    %210 = arith.addf %206, %209 : vector<8x128xf32>
    %c0_97 = arith.constant 0 : index
    %c0_98 = arith.constant 0 : index
    %211 = vector.load %arg9[%c0_97, %c0_98] : memref<8x128xf32, #tpu.memory_space<vmem>>, vector<8x128xf32>
    tpu.vector_store %arg9[%c0_97, %c0_98], %210 {strides = array<i32>} : memref<8x128xf32, #tpu.memory_space<vmem>>, vector<8x128xf32>,
    %c3_i32_99 = arith.constant 3 : i32
    %212 = arith.cmpi eq, %arg1, %c3_i32_99 : i32
    %213 = arith.extui %212 : i1 to i32
    %c0_i32_100 = arith.constant 0 : i32
    %214 = arith.cmpi ne, %213, %c0_i32_100 : i32
    scf.if %214 {
      %c0_101 = arith.constant 0 : index
      %c0_102 = arith.constant 0 : index
      %215 = vector.load %arg9[%c0_101, %c0_102] : memref<8x128xf32, #tpu.memory_space<vmem>>, vector<8x128xf32>
      %c0_103 = arith.constant 0 : index
      %c0_104 = arith.constant 0 : index
      %216 = vector.load %arg8[%c0_103, %c0_104] : memref<1x128xf32, #tpu.memory_space<vmem>>, vector<1x128xf32>
      %217 = vector.broadcast %216 : vector<1x128xf32> to vector<8x128xf32>
      %218 = arith.addf %215, %217 : vector<8x128xf32>
      %219 = math.tanh %218 : vector<8x128xf32>
      %c0_105 = arith.constant 0 : index
      %c0_106 = arith.constant 0 : index
      %220 = vector.load %arg9[%c0_105, %c0_106] : memref<8x128xf32, #tpu.memory_space<vmem>>, vector<8x128xf32>
      tpu.vector_store %arg9[%c0_105, %c0_106], %219 {strides = array<i32>} : memref<8x128xf32, #tpu.memory_space<vmem>>, vector<8x128xf32>,
    } else {
    }
    return
  }
  func.func @transform_0(%arg0: i32, %arg1: i32) -> (i32, i32, i32, i32) {
    %c0_i32 = arith.constant 0 : i32
    %c0_i32_0 = arith.constant 0 : i32
    %c0_i32_1 = arith.constant 0 : i32
    return %arg1, %c0_i32, %arg0, %c0_i32_0 : i32, i32, i32, i32
  }
  func.func @transform_1(%arg0: i32, %arg1: i32) -> (i32, i32) {
    %c0_i32 = arith.constant 0 : i32
    %c0_i32_0 = arith.constant 0 : i32
    %c0_i32_1 = arith.constant 0 : i32
    return %c0_i32, %c0_i32_0 : i32, i32
  }
  func.func @transform_2(%arg0: i32, %arg1: i32) -> (i32, i32) {
    %c0_i32 = arith.constant 0 : i32
    %c0_i32_0 = arith.constant 0 : i32
    %c0_i32_1 = arith.constant 0 : i32
    return %c0_i32, %c0_i32_0 : i32, i32
  }
  func.func @transform_3(%arg0: i32, %arg1: i32) -> (i32, i32) {
    %c0_i32 = arith.constant 0 : i32
    %c0_i32_0 = arith.constant 0 : i32
    %c0_i32_1 = arith.constant 0 : i32
    return %c0_i32, %c0_i32_0 : i32, i32
  }
  func.func @transform_4(%arg0: i32, %arg1: i32) -> (i32, i32) {
    %c0_i32 = arith.constant 0 : i32
    %c0_i32_0 = arith.constant 0 : i32
    %c0_i32_1 = arith.constant 0 : i32
    return %c0_i32, %c0_i32_0 : i32, i32
  }
  func.func @transform_5(%arg0: i32, %arg1: i32) -> (i32, i32, i32) {
    %c0_i32 = arith.constant 0 : i32
    %c0_i32_0 = arith.constant 0 : i32
    %c0_i32_1 = arith.constant 0 : i32
    return %arg1, %c0_i32, %c0_i32_0 : i32, i32, i32
  }
  func.func @transform_6(%arg0: i32, %arg1: i32) -> (i32, i32) {
    %c0_i32 = arith.constant 0 : i32
    %c0_i32_0 = arith.constant 0 : i32
    %c0_i32_1 = arith.constant 0 : i32
    return %c0_i32, %c0_i32_0 : i32, i32
  }
  func.func @transform_7(%arg0: i32, %arg1: i32) -> (i32, i32) {
    %c0_i32 = arith.constant 0 : i32
    %c0_i32_0 = arith.constant 0 : i32
    return %arg0, %c0_i32 : i32, i32
  }
}

</mosaic_0001>

<bundles_post_ra>
// kernel: tile.8
= control target key start
LH: loop header
LB: loop body
LE: loop exit
PB: predicated region body
PF: predicated region fallthrough
CT: control target
= control target key end

     0   :  { %s22_s0 = inlined_call_operand.vmem [shape: f32[32], index: 0, kind: input, shape index: {}]   ;;  %s23_s1 = inlined_call_operand.vmem [shape: f32[3,32], index: 1, kind: output, shape index: {}]  }
   0x1   :  { %v4_v0 = vld [vmem:[%s22_s0] ss:$0 sm:$0xff] }
   0x2   :  { %5 = vst [vmem:[%s23_s1] sm:$0xf] %v4_v0 }

// kernel: tile.9
= control target key start
LH: loop header
LB: loop body
LE: loop exit
PB: predicated region body
PF: predicated region fallthrough
CT: control target
= control target key end

     0   :  { %vm7_vm0 = vcmask 261120   ;;  %s30_s8 = smov 32   ;;  %vm13_vm1 = vcmask 785920   ;;  %vm19_vm2 = vcmask 523520   ;;  %s47_s0 = inlined_call_operand.vmem [shape: f32[3,32], index: 0, kind: input, shape index: {}]   ;;  %s48_s1 = inlined_call_operand.vmem [shape: f32[1,96], index: 1, kind: output, shape index: {}]  }
   0x1   :  { %v4_v0 = vld [vmem:[%s47_s0] sm:$0xf]  ;;  %s29_s0 = smov 64  }
   0x2   :  { %5 = vst [vmem:[#allocation1] sm:$0xf] %v4_v0 }
   0x9   :  { %v10_v1 = vld [vmem:[#allocation1 + $0x2] sm:$0x1]   ;;  %v6_v2 = vld [vmem:[#allocation1] sm:$0x1]   ;;  %v16_v3 = vld [vmem:[#allocation1 + $0x1] sm:$0x1]  }
   0xa   :  { %11 = vrot.lane.b32.xlu0 %v10_v1, %s29_s0  ;;  %8 = vst.msk [vmem:[#allocation0] sm:$0x1] %vm7_vm0, %v6_v2  }
   0xe   :  { %17 = vrot.lane.b32.xlu0 %v16_v3, %s30_s8 }
  0x7c   :  { %v12_v4 = vpop.permute.xlu0 %11  }
  0x7d   :  { %14 = vst.msk [vmem:[#allocation0] sm:$0x1] %vm13_vm1, %v12_v4  }
  0x80   :  { %v18_v5 = vpop.permute.xlu0 %17  }
  0x81   :  { %20 = vst.msk [vmem:[#allocation0] sm:$0x1] %vm19_vm2, %v18_v5  }
  0x88   :  { %v24_v6 = vld [vmem:[#allocation0] sm:$0x1] }
  0x89   :  { %26 = vst [vmem:[%s48_s1] sm:$0x1] %v24_v6 }

// kernel: polar_encoder_forward.1
= control target key start
LH: loop header
LB: loop body
LE: loop exit
PB: predicated region body
PF: predicated region fallthrough
CT: control target
= control target key end

     0   :  { %12 = vsyncpa [#allocation3], 0  ;;  %s4928_s24 = smov 0   ;;  %s4930_s25 = smov 0   ;;  %s5645_s0 = inlined_call_operand.vmem [shape: f32[4,16,8,27], index: 0, kind: input, shape index: {}]   ;;  %s5646_s1 = inlined_call_operand.vmem [shape: f32[27,96], index: 1, kind: input, shape index: {}]   ;;  %s5647_s2 = inlined_call_operand.vmem [shape: f32[1,96], index: 2, kind: input, shape index: {}]   ;;  %s5648_s3 = inlined_call_operand.vmem [shape: f32[96,32], index: 3, kind: input, shape index: {}]   ;;  %s5649_s4 = inlined_call_operand.vmem [shape: f32[1,32], index: 4, kind: input, shape index: {}]   ;;  %s5650_s5 = inlined_call_operand.vmem [shape: f32[4,512,128], index: 5, kind: input, shape index: {}]   ;;  %s5651_s6 = inlined_call_operand.vmem [shape: f32[1,128], index: 6, kind: input, shape index: {}]   ;;  %s5652_s7 = inlined_call_operand.hbm [shape: f32[8,128], index: 7, kind: output, shape index: {}]  }
   0x1   :  { %s4932_s26 = smov 0  }
   0x2 LB: > { %s3146_s27 = sadd.s32 4294967295, %s4877_s26   ;;  %s27_s28 = sadd.s32 1, %s4873_s25  ;;  %s4877_s26 = sphi %s4932_s26, %s18_s26   ;;  %s4873_s25 = sphi %s4930_s25, %s5657_s25   ;;  %s4869_s24 = sphi %s4928_s24, %s5656_s24  }
   0x3   : > { %p28_p0 = scmp.ge.s32.totalorder %s27_s28, 4  ;;  %p3149_p1 = scmp.ge.s32.totalorder %s4877_s26, 1 }
   0x4   : > { %p265_p2 = scmp.lt.s32.totalorder %s4877_s26, 5 }
   0x5   : > { %s5659_s28 = smov (%p28_p0, %s27_s28), 0 }
   0x6   : > { %p266_p3 = pnand %p3149_p1, %p265_p2 }
   0x7   : > { %p300_p4 = scmp.lt.s32.totalorder (!%p266_p3), %s4869_s24, 3  ;;  %p3154_p5 = scmp.ne.s32.totalorder (!%p266_p3), %s4869_s24, 0 }
   0x8   : > { %269 = sbr.rel (%p266_p3) target bundleno = 2517 (0x9d5), region = 48 }
   0xf   : > { %s301_s29 = scalar_select %p300_p4, %s4869_s24, 3 }
  0x10   : > { %316 = sbr.rel (%p3154_p5) target bundleno = 23 (0x17), region = 52  ;;  %v4879_v0 = vmov (!%p3154_p5), 0.0  }
  0x11   : > { %s3226_s30 = sshll.u32 %s301_s29, 7  ;;  %s3227_s8 = sshll.u32 %s301_s29, 9  ;;  %317 = vst [vmem:[#allocation2] sm:$0xff] (!%p3154_p5), %v4879_v0 }
  0x12   : > { %s4954_s11 = scalar_lea.vmem %s5645_s0, %s3226_s30  ;;  %s4959_s14 = scalar_lea.vmem %s5650_s5, %s3227_s8 }
  0x17 PF: > { %v318_v1 = vld [vmem:[%s5646_s1] sm:$0xff]  ;;  %v319_v2 = vld [vmem:[%s5646_s1 + $0x8] sm:$0xff]  ;;  %v320_v3 = vld [vmem:[%s5646_s1 + $0x10] sm:$0xff]  ;;  %vm347_vm0 = vcmask 1042432   ;;  %v4880_v4 = vmov 0.0|0.0   ;;  %vm4881_vm1 = vmmov 0   ;;  %v422_v33 = vlaneseq }
  0x18   : > { %4194 = vmatprep.subr.bf16.mxu1 %v4880_v4  ;;  %4219 = vmatprep.subr.bf16.mxu0 %v4880_v4  ;;  %v4975_v5 = vpack.c.bf16 %v319_v2, %v318_v1  ;;  %v321_v6 = vld [vmem:[%s5646_s1 + $0x18] sm:$0x7]  ;;  %v4882_v7 = vmov 0.0   ;;  %vm4883_vm2 = vmmov 1   ;;  %v323_v10 = vld [vmem:[%s5648_s3] sm:$0xff]  ;;  %v324_v11 = vld [vmem:[%s5648_s3 + $0x8] sm:$0xff] }
  0x19   : > { %3594 = vmatprep.mubr.msk.f32.mxu1 %vm4881_vm1, %v4882_v7  ;;  %3632 = vmatprep.mubr.msk.f32.mxu0 %vm4881_vm1, %v4882_v7  ;;  %v4986_v8 = vpack.c.bf16 %v321_v6, %v320_v3  ;;  %vm4991_vm3 = vmpackc.low %vm347_vm0, %vm4883_vm2  ;;  %v336_v12 = vld [vmem:[%s4954_s11] sm:$0xff]  ;;  %vm343_vm4 = vcmask 220160   ;;  %v3160_v13 = vld [vmem:[%s4954_s11 + $0x8] sm:$0xff]  ;;  %v5009_v14 = vpack.c.bf16 %v324_v11, %v323_v10  ;;  %s426_s17 = scalar_select %p3154_p5, 1, 0  ;;  %v5092_v38 = vand.u32 127, %v422_v33 }
  0x1a   : > { %4196 = vmatpush3.bf16.msra.mxu1 %v4975_v5  ;;  %4221 = vmatpush3.bf16.msra.mxu0 %v4975_v5  ;;  %v325_v15 = vld [vmem:[%s5648_s3 + $0x10] sm:$0xff]  ;;  %v326_v16 = vld [vmem:[%s5648_s3 + $0x18] sm:$0xff]  ;;  %v327_v18 = vld [vmem:[%s5648_s3 + $0x20] sm:$0xff]  ;;  %vm437_vm6 = vcmask 785408   ;;  %s4884_s21 = smov 32   ;;  %s4885_s22 = smov 64  }
  0x1b   : > { %4197 = vmatprep.subr.bf16.mxu1 %v4880_v4  ;;  %4222 = vmatprep.subr.bf16.mxu0 %v4880_v4  ;;  %v5023_v17 = vpack.c.bf16 %v326_v16, %v325_v15  ;;  %v328_v19 = vld [vmem:[%s5648_s3 + $0x28] sm:$0xff]  ;;  %v329_v21 = vld [vmem:[%s5648_s3 + $0x30] sm:$0xff]  ;;  %v330_v22 = vld [vmem:[%s5648_s3 + $0x38] sm:$0xff]  ;;  %s427_s18 = scvt.s32.f32 %s426_s17  ;;  %vm424_vm5 = vcmp.lt.s32.totalorder %v5092_v38, 32  ;;  %p2704_p6 = scmp.ne.s32.totalorder %s4869_s24, 3  ;;  %vm2703_vm7 = vcmp.ge.s32.totalorder %v5092_v38, 64 }
  0x1c   : > { %v5039_v20 = vpack.c.bf16 %v328_v19, %v327_v18  ;;  %v5053_v23 = vpack.c.bf16 %v330_v22, %v329_v21  ;;  %v331_v24 = vld [vmem:[%s5648_s3 + $0x40] sm:$0xff]  ;;  %v332_v25 = vld [vmem:[%s5648_s3 + $0x48] sm:$0xff]  ;;  %v333_v26 = vld [vmem:[%s5648_s3 + $0x50] sm:$0xff]  ;;  %s4886_s29 = smov 96   ;;  %vm2833_vm8 = vcmask 261120   ;;  %vm2835_vm9 = vcmask 523264  }
  0x1d   : > { %v5068_v27 = vpack.c.bf16 %v332_v25, %v331_v24  ;;  %v334_v28 = vld [vmem:[%s5648_s3 + $0x58] sm:$0xff]  ;;  %v5086_v30 = vld [vmem:[%s5647_s2] ss:$0 sm:$0xff]  ;;  %v428_v39 = vstv %s427_s18  ;;  %v3164_v45 = vld [vmem:[%s4954_s11 + $0x10] sm:$0xff] }
  0x1e   : > { %4200 = vmatpush3.bf16.msk.msra.mxu1 %vm4991_vm3, %v4986_v8  ;;  %4225 = vmatpush3.bf16.msk.msra.mxu0 %vm4991_vm3, %v4986_v8  ;;  %v5075_v29 = vpack.c.bf16 %v334_v28, %v333_v26  ;;  %v429_v40 = vsel %vm424_vm5, %v428_v39, 1.0  ;;  %v3168_v44 = vld [vmem:[%s4954_s11 + $0x18] sm:$0xff]  ;;  %v3176_v58 = vld [vmem:[%s4954_s11 + $0x28] sm:$0xff]  ;;  %v3172_v59 = vld [vmem:[%s4954_s11 + $0x20] sm:$0xff] }
  0x1f   : > { %4226 = vmatprep.subr.bf16.mxu0 %v4880_v4  ;;  %4201 = vmatprep.subr.bf16.mxu1 %v4880_v4  ;;  %v3180_v15 = vld [vmem:[%s4954_s11 + $0x30] sm:$0xff]  ;;  %v2864_v38 = vld [vmem:[%s4959_s14 + $0x80] sm:$0xff] }
  0x21   : > { %3595 = vmatmul.mubr.msk.f32.vlgmr.msra.gmra.mrb[0].mxu1 %vm343_vm4, %v336_v12  ;;  %3633 = vmatmul.mubr.msk.f32.vlgmr.msra.gmra.mrb[0].mxu0 %vm343_vm4, %v3160_v13  ;;  %v3184_v13 = vld [vmem:[%s4954_s11 + $0x38] sm:$0xff] }
  0x22   : > { %4228 = vmatpush3.bf16.msra.mxu0 %v5009_v14  ;;  %4203 = vmatpush3.bf16.msra.mxu1 %v5009_v14 }
  0x23   : > { %4229 = vmatprep.subr.bf16.mxu0 %v4880_v4  ;;  %4204 = vmatprep.subr.bf16.mxu1 %v4880_v4 }
  0x24   : > { %3659 = vmatprep.mubr.msk.f32.mxu0 %vm4881_vm1, %v4882_v7  ;;  %3621 = vmatprep.mubr.msk.f32.mxu1 %vm4881_vm1, %v4882_v7 }
  0x26   : > { %4231 = vmatpush3.bf16.msra.mxu0 %v5023_v17  ;;  %4206 = vmatpush3.bf16.msra.mxu1 %v5023_v17 }
  0x27   : > { %4232 = vmatprep.subr.bf16.mxu0 %v4880_v4  ;;  %4207 = vmatprep.subr.bf16.mxu1 %v4880_v4 }
  0x2a   : > { %4234 = vmatpush3.bf16.msra.mxu0 %v5039_v20  ;;  %4209 = vmatpush3.bf16.msra.mxu1 %v5039_v20 }
  0x2b   : > { %4235 = vmatprep.subr.bf16.mxu0 %v4880_v4  ;;  %4210 = vmatprep.subr.bf16.mxu1 %v4880_v4 }
  0x2e   : > { %4237 = vmatpush3.bf16.msra.mxu0 %v5053_v23  ;;  %4212 = vmatpush3.bf16.msra.mxu1 %v5053_v23 }
  0x2f   : > { %4238 = vmatprep.subr.bf16.mxu0 %v4880_v4  ;;  %4213 = vmatprep.subr.bf16.mxu1 %v4880_v4 }
  0x32   : > { %4240 = vmatpush3.bf16.msra.mxu0 %v5068_v27  ;;  %4215 = vmatpush3.bf16.msra.mxu1 %v5068_v27 }
  0x33   : > { %4241 = vmatprep.subr.bf16.mxu0 %v4880_v4  ;;  %4216 = vmatprep.subr.bf16.mxu1 %v4880_v4 }
  0x36   : > { %4243 = vmatpush3.bf16.msra.mxu0 %v5075_v29  ;;  %4218 = vmatpush3.bf16.msra.mxu1 %v5075_v29 }
  0x37   : > { %4269 = vmatprep.subr.bf16.mxu0 %v4880_v4  ;;  %4244 = vmatprep.subr.bf16.mxu1 %v4880_v4 }
  0xf4   : > { %v417_v31 = vpop.f32.mrb[0].mxu1  ;;  %v584_v32 = vpop.f32.mrb[0].mxu0 }
  0xf5   : > { %v418_v34 = vadd.f32 %v5086_v30, %v417_v31  ;;  %v585_v35 = vadd.f32 %v5086_v30, %v584_v32  ;;  %v3596_v36 = vpop.f32.mrb[1].mxu1  ;;  %v3634_v37 = vpop.f32.mrb[1].mxu0 }
  0xf7   : > { %4727 = vtanh.f32 %v418_v34  ;;  %v3192_v34 = vld [vmem:[%s4954_s11 + $0x48] sm:$0xff] }
  0xf8   : > { %4729 = vtanh.f32 %v585_v35  ;;  %v3188_v35 = vld [vmem:[%s4954_s11 + $0x40] sm:$0xff] }
 0x101   : > { %v4728_v41 = vpop.eup %4727 }
 0x102   : > { %v4730_v42 = vpop.eup %4729  ;;  %v430_v43 = vmul.f32 %v4728_v41, %v429_v40 }
 0x103   : > { %3660 = vmatmul.mubr.msk.f32.vlgmr.msra.gmra.mrb[2].mxu0 %vm437_vm6, %v4730_v42 }
 0x104   : > { %4271 = vmatpush3.bf16.msra.mxu0 %v4975_v5  ;;  %3622 = vmatmul.mubr.msk.f32.vlgmr.msra.gmra.mrb[2].mxu1 %vm437_vm6, %v430_v43 }
 0x105   : > { %4246 = vmatpush3.bf16.msra.mxu1 %v4975_v5  ;;  %4272 = vmatprep.subr.bf16.mxu0 %v4880_v4 }
 0x106   : > { %4247 = vmatprep.subr.bf16.mxu1 %v4880_v4  ;;  %3708 = vmatprep.mubr.msk.f32.mxu0 %vm4881_vm1, %v4882_v7 }
 0x107   : > { %3670 = vmatprep.mubr.msk.f32.mxu1 %vm4881_vm1, %v4882_v7 }
 0x108   : > { %4275 = vmatpush3.bf16.msk.msra.mxu0 %vm4991_vm3, %v4986_v8 }
 0x109   : > { %4250 = vmatpush3.bf16.msk.msra.mxu1 %vm4991_vm3, %v4986_v8  ;;  %4276 = vmatprep.subr.bf16.mxu0 %v4880_v4 }
 0x10a   : > { %4251 = vmatprep.subr.bf16.mxu1 %v4880_v4 }
 0x10b   : > { %3709 = vmatmul.mubr.msk.f32.vlgmr.msra.gmra.mrb[4].mxu0 %vm343_vm4, %v3168_v44 }
 0x10c   : > { %3671 = vmatmul.mubr.msk.f32.vlgmr.msra.gmra.mrb[4].mxu1 %vm343_vm4, %v3164_v45  ;;  %4278 = vmatpush3.bf16.msra.mxu0 %v5009_v14 }
 0x10d   : > { %4253 = vmatpush3.bf16.msra.mxu1 %v5009_v14  ;;  %4279 = vmatprep.subr.bf16.mxu0 %v4880_v4 }
 0x10e   : > { %4254 = vmatprep.subr.bf16.mxu1 %v4880_v4  ;;  %3735 = vmatprep.mubr.msk.f32.mxu0 %vm4881_vm1, %v4882_v7 }
 0x10f   : > { %3697 = vmatprep.mubr.msk.f32.mxu1 %vm4881_vm1, %v4882_v7 }
 0x110   : > { %4281 = vmatpush3.bf16.msra.mxu0 %v5023_v17 }
 0x111   : > { %4256 = vmatpush3.bf16.msra.mxu1 %v5023_v17  ;;  %4282 = vmatprep.subr.bf16.mxu0 %v4880_v4 }
 0x112   : > { %4257 = vmatprep.subr.bf16.mxu1 %v4880_v4 }
 0x114   : > { %4284 = vmatpush3.bf16.msra.mxu0 %v5039_v20 }
 0x115   : > { %4259 = vmatpush3.bf16.msra.mxu1 %v5039_v20  ;;  %4285 = vmatprep.subr.bf16.mxu0 %v4880_v4 }
 0x116   : > { %4260 = vmatprep.subr.bf16.mxu1 %v4880_v4 }
 0x118   : > { %4287 = vmatpush3.bf16.msra.mxu0 %v5053_v23 }
 0x119   : > { %4262 = vmatpush3.bf16.msra.mxu1 %v5053_v23  ;;  %4288 = vmatprep.subr.bf16.mxu0 %v4880_v4 }
 0x11a   : > { %4263 = vmatprep.subr.bf16.mxu1 %v4880_v4 }
 0x11c   : > { %4290 = vmatpush3.bf16.msra.mxu0 %v5068_v27 }
 0x11d   : > { %4265 = vmatpush3.bf16.msra.mxu1 %v5068_v27  ;;  %4291 = vmatprep.subr.bf16.mxu0 %v4880_v4 }
 0x11e   : > { %4266 = vmatprep.subr.bf16.mxu1 %v4880_v4 }
 0x120   : > { %4293 = vmatpush3.bf16.msra.mxu0 %v5075_v29 }
 0x121   : > { %4268 = vmatpush3.bf16.msra.mxu1 %v5075_v29  ;;  %4319 = vmatprep.subr.bf16.mxu0 %v4880_v4 }
 0x122   : > { %4294 = vmatprep.subr.bf16.mxu1 %v4880_v4 }
 0x1d6   : > { %v5145_v46 = vpop.f32.mrb[2].mxu0 }
 0x1d7   : > { %v5147_v47 = vpop.f32.mrb[2].mxu1  ;;  %v3661_v48 = vpop.f32.mrb[3].mxu0 }
 0x1d8   : > { %v3623_v49 = vpop.f32.mrb[3].mxu1 }
 0x1de   : > { %v886_v50 = vpop.f32.mrb[4].mxu0 }
 0x1df   : > { %v887_v51 = vadd.f32 %v5086_v30, %v886_v50  ;;  %v735_v52 = vpop.f32.mrb[4].mxu1  ;;  %v3710_v53 = vpop.f32.mrb[5].mxu0 }
 0x1e0   : > { %v736_v54 = vadd.f32 %v5086_v30, %v735_v52  ;;  %v3672_v55 = vpop.f32.mrb[5].mxu1  ;;  %v3196_v52 = vld [vmem:[%s4954_s11 + $0x50] sm:$0xff]  ;;  %v5372_v53 = vld [vmem:[%s5649_s4] ss:$0 sm:$0xff] }
 0x1e1   : > { %4731 = vtanh.f32 %v887_v51  ;;  %v3200_v51 = vld [vmem:[%s4954_s11 + $0x58] sm:$0xff] }
 0x1e2   : > { %4733 = vtanh.f32 %v736_v54  ;;  %v659_v54 = vadd.f32 %v5372_v53, %v5145_v46 }
 0x1eb   : > { %v4732_v56 = vpop.eup %4731 }
 0x1ec   : > { %v4734_v57 = vpop.eup %4733  ;;  %3736 = vmatmul.mubr.msk.f32.vlgmr.msra.gmra.mrb[6].mxu0 %vm437_vm6, %v4732_v56 }
 0x1ed   : > { %4321 = vmatpush3.bf16.msra.mxu0 %v4975_v5  ;;  %3698 = vmatmul.mubr.msk.f32.vlgmr.msra.gmra.mrb[6].mxu1 %vm437_vm6, %v4734_v57 }
 0x1ee   : > { %4296 = vmatpush3.bf16.msra.mxu1 %v4975_v5  ;;  %4322 = vmatprep.subr.bf16.mxu0 %v4880_v4 }
 0x1ef   : > { %4297 = vmatprep.subr.bf16.mxu1 %v4880_v4  ;;  %3784 = vmatprep.mubr.msk.f32.mxu0 %vm4881_vm1, %v4882_v7 }
 0x1f0   : > { %3746 = vmatprep.mubr.msk.f32.mxu1 %vm4881_vm1, %v4882_v7 }
 0x1f1   : > { %4325 = vmatpush3.bf16.msk.msra.mxu0 %vm4991_vm3, %v4986_v8 }
 0x1f2   : > { %4300 = vmatpush3.bf16.msk.msra.mxu1 %vm4991_vm3, %v4986_v8  ;;  %4326 = vmatprep.subr.bf16.mxu0 %v4880_v4 }
 0x1f3   : > { %4301 = vmatprep.subr.bf16.mxu1 %v4880_v4 }
 0x1f4   : > { %3785 = vmatmul.mubr.msk.f32.vlgmr.msra.gmra.mrb[8].mxu0 %vm343_vm4, %v3176_v58 }
 0x1f5   : > { %3747 = vmatmul.mubr.msk.f32.vlgmr.msra.gmra.mrb[8].mxu1 %vm343_vm4, %v3172_v59  ;;  %4328 = vmatpush3.bf16.msra.mxu0 %v5009_v14 }
 0x1f6   : > { %4303 = vmatpush3.bf16.msra.mxu1 %v5009_v14  ;;  %4329 = vmatprep.subr.bf16.mxu0 %v4880_v4 }
 0x1f7   : > { %4304 = vmatprep.subr.bf16.mxu1 %v4880_v4  ;;  %3811 = vmatprep.mubr.msk.f32.mxu0 %vm4881_vm1, %v4882_v7 }
 0x1f8   : > { %3773 = vmatprep.mubr.msk.f32.mxu1 %vm4881_vm1, %v4882_v7 }
 0x1f9   : > { %4331 = vmatpush3.bf16.msra.mxu0 %v5023_v17 }
 0x1fa   : > { %4306 = vmatpush3.bf16.msra.mxu1 %v5023_v17  ;;  %4332 = vmatprep.subr.bf16.mxu0 %v4880_v4 }
 0x1fb   : > { %4307 = vmatprep.subr.bf16.mxu1 %v4880_v4 }
 0x1fd   : > { %4334 = vmatpush3.bf16.msra.mxu0 %v5039_v20 }
 0x1fe   : > { %4309 = vmatpush3.bf16.msra.mxu1 %v5039_v20  ;;  %4335 = vmatprep.subr.bf16.mxu0 %v4880_v4 }
 0x1ff   : > { %4310 = vmatprep.subr.bf16.mxu1 %v4880_v4 }
 0x201   : > { %4337 = vmatpush3.bf16.msra.mxu0 %v5053_v23 }
 0x202   : > { %4312 = vmatpush3.bf16.msra.mxu1 %v5053_v23  ;;  %4338 = vmatprep.subr.bf16.mxu0 %v4880_v4 }
 0x203   : > { %4313 = vmatprep.subr.bf16.mxu1 %v4880_v4 }
 0x205   : > { %4340 = vmatpush3.bf16.msra.mxu0 %v5068_v27 }
 0x206   : > { %4315 = vmatpush3.bf16.msra.mxu1 %v5068_v27  ;;  %4341 = vmatprep.subr.bf16.mxu0 %v4880_v4 }
 0x207   : > { %4316 = vmatprep.subr.bf16.mxu1 %v4880_v4 }
 0x209   : > { %4343 = vmatpush3.bf16.msra.mxu0 %v5075_v29 }
 0x20a   : > { %4318 = vmatpush3.bf16.msra.mxu1 %v5075_v29  ;;  %4369 = vmatprep.subr.bf16.mxu0 %v4880_v4 }
 0x20b   : > { %4344 = vmatprep.subr.bf16.mxu1 %v4880_v4 }
 0x2bf   : > { %v5201_v60 = vpop.f32.mrb[6].mxu0 }
 0x2c0   : > { %v5203_v61 = vpop.f32.mrb[6].mxu1  ;;  %v3737_v62 = vpop.f32.mrb[7].mxu0 }
 0x2c1   : > { %v3699_v63 = vpop.f32.mrb[7].mxu1 }
 0x2c7   : > { %v1188_v0 = vpop.f32.mrb[8].mxu0 }
 0x2c8   : > { %v1189_v1 = vadd.f32 %v5086_v30, %v1188_v0  ;;  %v1037_v2 = vpop.f32.mrb[8].mxu1  ;;  %v3786_v3 = vpop.f32.mrb[9].mxu0 }
 0x2c9   : > { %v1038_v6 = vadd.f32 %v5086_v30, %v1037_v2  ;;  %v3748_v10 = vpop.f32.mrb[9].mxu1 }
 0x2ca   : > { %4735 = vtanh.f32 %v1189_v1 }
 0x2cb   : > { %4737 = vtanh.f32 %v1038_v6 }
 0x2d4   : > { %v4736_v11 = vpop.eup %4735 }
 0x2d5   : > { %v4738_v12 = vpop.eup %4737  ;;  %3812 = vmatmul.mubr.msk.f32.vlgmr.msra.gmra.mrb[10].mxu0 %vm437_vm6, %v4736_v11 }
 0x2d6   : > { %4371 = vmatpush3.bf16.msra.mxu0 %v4975_v5  ;;  %3774 = vmatmul.mubr.msk.f32.vlgmr.msra.gmra.mrb[10].mxu1 %vm437_vm6, %v4738_v12 }
 0x2d7   : > { %4346 = vmatpush3.bf16.msra.mxu1 %v4975_v5  ;;  %4372 = vmatprep.subr.bf16.mxu0 %v4880_v4 }
 0x2d8   : > { %4347 = vmatprep.subr.bf16.mxu1 %v4880_v4  ;;  %3860 = vmatprep.mubr.msk.f32.mxu0 %vm4881_vm1, %v4882_v7 }
 0x2d9   : > { %3822 = vmatprep.mubr.msk.f32.mxu1 %vm4881_vm1, %v4882_v7 }
 0x2da   : > { %4375 = vmatpush3.bf16.msk.msra.mxu0 %vm4991_vm3, %v4986_v8 }
 0x2db   : > { %4350 = vmatpush3.bf16.msk.msra.mxu1 %vm4991_vm3, %v4986_v8  ;;  %4376 = vmatprep.subr.bf16.mxu0 %v4880_v4 }
 0x2dc   : > { %4351 = vmatprep.subr.bf16.mxu1 %v4880_v4 }
 0x2dd   : > { %3861 = vmatmul.mubr.msk.f32.vlgmr.msra.gmra.mrb[12].mxu0 %vm343_vm4, %v3184_v13 }
 0x2de   : > { %3823 = vmatmul.mubr.msk.f32.vlgmr.msra.gmra.mrb[12].mxu1 %vm343_vm4, %v3180_v15  ;;  %4378 = vmatpush3.bf16.msra.mxu0 %v5009_v14 }
 0x2df   : > { %4353 = vmatpush3.bf16.msra.mxu1 %v5009_v14  ;;  %4379 = vmatprep.subr.bf16.mxu0 %v4880_v4 }
 0x2e0   : > { %4354 = vmatprep.subr.bf16.mxu1 %v4880_v4  ;;  %3887 = vmatprep.mubr.msk.f32.mxu0 %vm4881_vm1, %v4882_v7 }
 0x2e1   : > { %3849 = vmatprep.mubr.msk.f32.mxu1 %vm4881_vm1, %v4882_v7 }
 0x2e2   : > { %4381 = vmatpush3.bf16.msra.mxu0 %v5023_v17 }
 0x2e3   : > { %4356 = vmatpush3.bf16.msra.mxu1 %v5023_v17  ;;  %4382 = vmatprep.subr.bf16.mxu0 %v4880_v4 }
 0x2e4   : > { %4357 = vmatprep.subr.bf16.mxu1 %v4880_v4 }
 0x2e6   : > { %4384 = vmatpush3.bf16.msra.mxu0 %v5039_v20 }
 0x2e7   : > { %4359 = vmatpush3.bf16.msra.mxu1 %v5039_v20  ;;  %4385 = vmatprep.subr.bf16.mxu0 %v4880_v4 }
 0x2e8   : > { %4360 = vmatprep.subr.bf16.mxu1 %v4880_v4 }
 0x2ea   : > { %4387 = vmatpush3.bf16.msra.mxu0 %v5053_v23 }
 0x2eb   : > { %4362 = vmatpush3.bf16.msra.mxu1 %v5053_v23  ;;  %4388 = vmatprep.subr.bf16.mxu0 %v4880_v4 }
 0x2ec   : > { %4363 = vmatprep.subr.bf16.mxu1 %v4880_v4 }
 0x2ee   : > { %4390 = vmatpush3.bf16.msra.mxu0 %v5068_v27 }
 0x2ef   : > { %4365 = vmatpush3.bf16.msra.mxu1 %v5068_v27  ;;  %4391 = vmatprep.subr.bf16.mxu0 %v4880_v4 }
 0x2f0   : > { %4366 = vmatprep.subr.bf16.mxu1 %v4880_v4 }
 0x2f2   : > { %4393 = vmatpush3.bf16.msra.mxu0 %v5075_v29 }
 0x2f3   : > { %4368 = vmatpush3.bf16.msra.mxu1 %v5075_v29  ;;  %4419 = vmatprep.subr.bf16.mxu0 %v4880_v4 }
 0x2f4   : > { %4394 = vmatprep.subr.bf16.mxu1 %v4880_v4 }
 0x3a8   : > { %v5257_v16 = vpop.f32.mrb[10].mxu0 }
 0x3a9   : > { %v5259_v18 = vpop.f32.mrb[10].mxu1  ;;  %v3813_v19 = vpop.f32.mrb[11].mxu0 }
 0x3aa   : > { %v3775_v21 = vpop.f32.mrb[11].mxu1  ;;  %v3208_v19 = vld [vmem:[%s4954_s11 + $0x68] sm:$0xff] }
 0x3ab   : > { %v3204_v21 = vld [vmem:[%s4954_s11 + $0x60] sm:$0xff] }
 0x3b0   : > { %v1490_v22 = vpop.f32.mrb[12].mxu0 }
 0x3b1   : > { %v1491_v24 = vadd.f32 %v5086_v30, %v1490_v22  ;;  %v1339_v25 = vpop.f32.mrb[12].mxu1  ;;  %v3862_v26 = vpop.f32.mrb[13].mxu0  ;;  %v961_v22 = vadd.f32 %v5372_v53, %v5201_v60 }
 0x3b2   : > { %v1340_v28 = vadd.f32 %v5086_v30, %v1339_v25  ;;  %v3824_v31 = vpop.f32.mrb[13].mxu1 }
 0x3b3   : > { %4739 = vtanh.f32 %v1491_v24  ;;  %v810_v24 = vadd.f32 %v5372_v53, %v5203_v61 }
 0x3b4   : > { %4741 = vtanh.f32 %v1340_v28 }
 0x3bd   : > { %v4740_v32 = vpop.eup %4739 }
 0x3be   : > { %v4742_v33 = vpop.eup %4741  ;;  %3888 = vmatmul.mubr.msk.f32.vlgmr.msra.gmra.mrb[14].mxu0 %vm437_vm6, %v4740_v32 }
 0x3bf   : > { %4421 = vmatpush3.bf16.msra.mxu0 %v4975_v5  ;;  %3850 = vmatmul.mubr.msk.f32.vlgmr.msra.gmra.mrb[14].mxu1 %vm437_vm6, %v4742_v33 }
 0x3c0   : > { %4396 = vmatpush3.bf16.msra.mxu1 %v4975_v5  ;;  %4422 = vmatprep.subr.bf16.mxu0 %v4880_v4 }
 0x3c1   : > { %4397 = vmatprep.subr.bf16.mxu1 %v4880_v4  ;;  %3936 = vmatprep.mubr.msk.f32.mxu0 %vm4881_vm1, %v4882_v7 }
 0x3c2   : > { %3898 = vmatprep.mubr.msk.f32.mxu1 %vm4881_vm1, %v4882_v7 }
 0x3c3   : > { %4425 = vmatpush3.bf16.msk.msra.mxu0 %vm4991_vm3, %v4986_v8 }
 0x3c4   : > { %4400 = vmatpush3.bf16.msk.msra.mxu1 %vm4991_vm3, %v4986_v8  ;;  %4426 = vmatprep.subr.bf16.mxu0 %v4880_v4 }
 0x3c5   : > { %4401 = vmatprep.subr.bf16.mxu1 %v4880_v4 }
 0x3c6   : > { %3937 = vmatmul.mubr.msk.f32.vlgmr.msra.gmra.mrb[16].mxu0 %vm343_vm4, %v3192_v34 }
 0x3c7   : > { %3899 = vmatmul.mubr.msk.f32.vlgmr.msra.gmra.mrb[16].mxu1 %vm343_vm4, %v3188_v35  ;;  %4428 = vmatpush3.bf16.msra.mxu0 %v5009_v14 }
 0x3c8   : > { %4403 = vmatpush3.bf16.msra.mxu1 %v5009_v14  ;;  %4429 = vmatprep.subr.bf16.mxu0 %v4880_v4 }
 0x3c9   : > { %4404 = vmatprep.subr.bf16.mxu1 %v4880_v4  ;;  %3963 = vmatprep.mubr.msk.f32.mxu0 %vm4881_vm1, %v4882_v7 }
 0x3ca   : > { %3925 = vmatprep.mubr.msk.f32.mxu1 %vm4881_vm1, %v4882_v7 }
 0x3cb   : > { %4431 = vmatpush3.bf16.msra.mxu0 %v5023_v17 }
 0x3cc   : > { %4406 = vmatpush3.bf16.msra.mxu1 %v5023_v17  ;;  %4432 = vmatprep.subr.bf16.mxu0 %v4880_v4 }
 0x3cd   : > { %4407 = vmatprep.subr.bf16.mxu1 %v4880_v4 }
 0x3cf   : > { %4434 = vmatpush3.bf16.msra.mxu0 %v5039_v20 }
 0x3d0   : > { %4409 = vmatpush3.bf16.msra.mxu1 %v5039_v20  ;;  %4435 = vmatprep.subr.bf16.mxu0 %v4880_v4 }
 0x3d1   : > { %4410 = vmatprep.subr.bf16.mxu1 %v4880_v4 }
 0x3d3   : > { %4437 = vmatpush3.bf16.msra.mxu0 %v5053_v23 }
 0x3d4   : > { %4412 = vmatpush3.bf16.msra.mxu1 %v5053_v23  ;;  %4438 = vmatprep.subr.bf16.mxu0 %v4880_v4 }
 0x3d5   : > { %4413 = vmatprep.subr.bf16.mxu1 %v4880_v4 }
 0x3d7   : > { %4440 = vmatpush3.bf16.msra.mxu0 %v5068_v27 }
 0x3d8   : > { %4415 = vmatpush3.bf16.msra.mxu1 %v5068_v27  ;;  %4441 = vmatprep.subr.bf16.mxu0 %v4880_v4 }
 0x3d9   : > { %4416 = vmatprep.subr.bf16.mxu1 %v4880_v4 }
 0x3db   : > { %4443 = vmatpush3.bf16.msra.mxu0 %v5075_v29 }
 0x3dc   : > { %4418 = vmatpush3.bf16.msra.mxu1 %v5075_v29  ;;  %4469 = vmatprep.subr.bf16.mxu0 %v4880_v4 }
 0x3dd   : > { %4444 = vmatprep.subr.bf16.mxu1 %v4880_v4 }
 0x491   : > { %v5313_v36 = vpop.f32.mrb[14].mxu0 }
 0x492   : > { %v5315_v37 = vpop.f32.mrb[14].mxu1  ;;  %v3889_v39 = vpop.f32.mrb[15].mxu0 }
 0x493   : > { %v3851_v40 = vpop.f32.mrb[15].mxu1 }
 0x499   : > { %v1792_v41 = vpop.f32.mrb[16].mxu0 }
 0x49a   : > { %v1793_v42 = vadd.f32 %v5086_v30, %v1792_v41  ;;  %v1641_v43 = vpop.f32.mrb[16].mxu1  ;;  %v3938_v44 = vpop.f32.mrb[17].mxu0 }
 0x49b   : > { %v1642_v45 = vadd.f32 %v5086_v30, %v1641_v43  ;;  %v3900_v48 = vpop.f32.mrb[17].mxu1 }
 0x49c   : > { %4743 = vtanh.f32 %v1793_v42 }
 0x49d   : > { %4745 = vtanh.f32 %v1642_v45 }
 0x49e   : > { %4747 = vtanh.f32 %v659_v54 }
 0x4a6   : > { %v4744_v49 = vpop.eup %4743 }
 0x4a7   : > { %v4746_v50 = vpop.eup %4745  ;;  %3964 = vmatmul.mubr.msk.f32.vlgmr.msra.gmra.mrb[18].mxu0 %vm437_vm6, %v4744_v49 }
 0x4a8   : > { %4471 = vmatpush3.bf16.msra.mxu0 %v4975_v5  ;;  %3926 = vmatmul.mubr.msk.f32.vlgmr.msra.gmra.mrb[18].mxu1 %vm437_vm6, %v4746_v50  ;;  %v4748_v2 = vpop.eup %4747 }
 0x4a9   : > { %4446 = vmatpush3.bf16.msra.mxu1 %v4975_v5  ;;  %4472 = vmatprep.subr.bf16.mxu0 %v4880_v4 }
 0x4aa   : > { %4447 = vmatprep.subr.bf16.mxu1 %v4880_v4  ;;  %4012 = vmatprep.mubr.msk.f32.mxu0 %vm4881_vm1, %v4882_v7 }
 0x4ab   : > { %3974 = vmatprep.mubr.msk.f32.mxu1 %vm4881_vm1, %v4882_v7 }
 0x4ac   : > { %4475 = vmatpush3.bf16.msk.msra.mxu0 %vm4991_vm3, %v4986_v8 }
 0x4ad   : > { %4450 = vmatpush3.bf16.msk.msra.mxu1 %vm4991_vm3, %v4986_v8  ;;  %4476 = vmatprep.subr.bf16.mxu0 %v4880_v4 }
 0x4ae   : > { %4451 = vmatprep.subr.bf16.mxu1 %v4880_v4 }
 0x4af   : > { %4013 = vmatmul.mubr.msk.f32.vlgmr.msra.gmra.mrb[20].mxu0 %vm343_vm4, %v3200_v51 }
 0x4b0   : > { %3975 = vmatmul.mubr.msk.f32.vlgmr.msra.gmra.mrb[20].mxu1 %vm343_vm4, %v3196_v52  ;;  %4478 = vmatpush3.bf16.msra.mxu0 %v5009_v14 }
 0x4b1   : > { %4453 = vmatpush3.bf16.msra.mxu1 %v5009_v14  ;;  %4479 = vmatprep.subr.bf16.mxu0 %v4880_v4 }
 0x4b2   : > { %4454 = vmatprep.subr.bf16.mxu1 %v4880_v4  ;;  %4039 = vmatprep.mubr.msk.f32.mxu0 %vm4881_vm1, %v4882_v7 }
 0x4b3   : > { %4001 = vmatprep.mubr.msk.f32.mxu1 %vm4881_vm1, %v4882_v7 }
 0x4b4   : > { %4481 = vmatpush3.bf16.msra.mxu0 %v5023_v17 }
 0x4b5   : > { %4456 = vmatpush3.bf16.msra.mxu1 %v5023_v17  ;;  %4482 = vmatprep.subr.bf16.mxu0 %v4880_v4 }
 0x4b6   : > { %4457 = vmatprep.subr.bf16.mxu1 %v4880_v4 }
 0x4b8   : > { %4484 = vmatpush3.bf16.msra.mxu0 %v5039_v20 }
 0x4b9   : > { %4459 = vmatpush3.bf16.msra.mxu1 %v5039_v20  ;;  %4485 = vmatprep.subr.bf16.mxu0 %v4880_v4 }
 0x4ba   : > { %4460 = vmatprep.subr.bf16.mxu1 %v4880_v4 }
 0x4bc   : > { %4487 = vmatpush3.bf16.msra.mxu0 %v5053_v23 }
 0x4bd   : > { %4462 = vmatpush3.bf16.msra.mxu1 %v5053_v23  ;;  %4488 = vmatprep.subr.bf16.mxu0 %v4880_v4 }
 0x4be   : > { %4463 = vmatprep.subr.bf16.mxu1 %v4880_v4 }
 0x4c0   : > { %4490 = vmatpush3.bf16.msra.mxu0 %v5068_v27 }
 0x4c1   : > { %4465 = vmatpush3.bf16.msra.mxu1 %v5068_v27  ;;  %4491 = vmatprep.subr.bf16.mxu0 %v4880_v4 }
 0x4c2   : > { %4466 = vmatprep.subr.bf16.mxu1 %v4880_v4 }
 0x4c4   : > { %4493 = vmatpush3.bf16.msra.mxu0 %v5075_v29 }
 0x4c5   : > { %4468 = vmatpush3.bf16.msra.mxu1 %v5075_v29  ;;  %4519 = vmatprep.subr.bf16.mxu0 %v4880_v4 }
 0x4c6   : > { %4494 = vmatprep.subr.bf16.mxu1 %v4880_v4 }
 0x57a   : > { %v1866_v55 = vpop.f32.mrb[18].mxu0 }
 0x57b   : > { %v1867_v56 = vadd.f32 %v5372_v53, %v1866_v55  ;;  %v5377_v57 = vpop.f32.mrb[18].mxu1  ;;  %v3965_v58 = vpop.f32.mrb[19].mxu0 }
 0x57c   : > { %v3927_v59 = vpop.f32.mrb[19].mxu1 }
 0x57d   : > { %4749 = vtanh.f32 %v1867_v56  ;;  %v3212_v56 = vld [vmem:[%s4954_s11 + $0x70] sm:$0xff] }
 0x582   : > { %v2094_v62 = vpop.f32.mrb[20].mxu0 }
 0x583   : > { %v2095_v63 = vadd.f32 %v5086_v30, %v2094_v62  ;;  %v1943_v0 = vpop.f32.mrb[20].mxu1  ;;  %v4014_v1 = vpop.f32.mrb[21].mxu0 }
 0x584   : > { %v1944_v3 = vadd.f32 %v5086_v30, %v1943_v0  ;;  %v3976_v6 = vpop.f32.mrb[21].mxu1 }
 0x585   : > { %4751 = vtanh.f32 %v2095_v63 }
 0x586   : > { %4753 = vtanh.f32 %v1944_v3 }
 0x587   : > { %v4750_v46 = vpop.eup %4749  ;;  %4755 = vtanh.f32 %v4748_v2 }
 0x588   : > { %4757 = vtanh.f32 %v4750_v46 }
 0x589   : > { %4759 = vtanh.f32 %v961_v22 }
 0x58a   : > { %4761 = vtanh.f32 %v810_v24  ;;  %v2880_v24 = vld [vmem:[%s4959_s14 + $0x100] sm:$0xff] }
 0x58f   : > { %v4752_v10 = vpop.eup %4751 }
 0x590   : > { %v4754_v11 = vpop.eup %4753  ;;  %4040 = vmatmul.mubr.msk.f32.vlgmr.msra.gmra.mrb[22].mxu0 %vm437_vm6, %v4752_v10  ;;  %v2865_v10 = vld [vmem:[%s4959_s14 + $0x88] sm:$0xff] }
 0x591   : > { %v4756_v12 = vpop.eup %4755  ;;  %4521 = vmatpush3.bf16.msra.mxu0 %v4975_v5  ;;  %4002 = vmatmul.mubr.msk.f32.vlgmr.msra.gmra.mrb[22].mxu1 %vm437_vm6, %v4754_v11  ;;  %v2896_v11 = vld [vmem:[%s4959_s14 + $0x180] sm:$0xff] }
 0x592   : > { %v4758_v13 = vpop.eup %4757  ;;  %4496 = vmatpush3.bf16.msra.mxu1 %v4975_v5  ;;  %4522 = vmatprep.subr.bf16.mxu0 %v4880_v4 }
 0x593   : > { %4497 = vmatprep.subr.bf16.mxu1 %v4880_v4  ;;  %v4697_v15 = vpack.i.bf16 %v4758_v13, %v4756_v12  ;;  %4088 = vmatprep.mubr.msk.f32.mxu0 %vm4881_vm1, %v4882_v7  ;;  %v4760_v34 = vpop.eup %4759  ;;  %v4594_v12 = vpack.c.bf16 %v2865_v10, %v2864_v38  ;;  %v2897_v13 = vld [vmem:[%s4959_s14 + $0x188] sm:$0xff]  ;;  %v2888_v10 = vld [vmem:[%s4959_s14 + $0x140] sm:$0xff] }
 0x594   : > { %4050 = vmatprep.mubr.msk.f32.mxu1 %vm4881_vm1, %v4882_v7  ;;  %v4762_v41 = vpop.eup %4761  ;;  %v2857_v38 = vld [vmem:[%s4959_s14 + $0x48] sm:$0xff] }
 0x595   : > { %4525 = vmatpush3.bf16.msk.msra.mxu0 %vm4991_vm3, %v4986_v8  ;;  %4698 = vrot.lane.b32.xlu0 %v4697_v15, %s4884_s21  ;;  %v2848_v15 = vld [vmem:[%s4959_s14] sm:$0xff] }
 0x596   : > { %4500 = vmatpush3.bf16.msk.msra.mxu1 %vm4991_vm3, %v4986_v8  ;;  %4526 = vmatprep.subr.bf16.mxu0 %v4880_v4 }
 0x597   : > { %4501 = vmatprep.subr.bf16.mxu1 %v4880_v4 }
 0x598   : > { %4089 = vmatmul.mubr.msk.f32.vlgmr.msra.gmra.mrb[24].mxu0 %vm343_vm4, %v3208_v19  ;;  %v2849_v19 = vld [vmem:[%s4959_s14 + $0x8] sm:$0xff] }
 0x599   : > { %4051 = vmatmul.mubr.msk.f32.vlgmr.msra.gmra.mrb[24].mxu1 %vm343_vm4, %v3204_v21  ;;  %4528 = vmatpush3.bf16.msra.mxu0 %v5009_v14  ;;  %v4626_v21 = vpack.c.bf16 %v2897_v13, %v2896_v11  ;;  %v4596_v22 = vpack.c.bf16 %v2849_v19, %v2848_v15  ;;  %v2874_v13 = vld [vmem:[%s4959_s14 + $0xd0] sm:$0xff]  ;;  %v2875_v15 = vld [vmem:[%s4959_s14 + $0xd8] sm:$0xff] }
 0x59a   : > { %4503 = vmatpush3.bf16.msra.mxu1 %v5009_v14  ;;  %4529 = vmatprep.subr.bf16.mxu0 %v4880_v4  ;;  %v2906_v19 = vld [vmem:[%s4959_s14 + $0x1d0] sm:$0xff] }
 0x59b   : > { %4504 = vmatprep.subr.bf16.mxu1 %v4880_v4  ;;  %4115 = vmatprep.mubr.msk.f32.mxu0 %vm4881_vm1, %v4882_v7 }
 0x59c   : > { %4077 = vmatprep.mubr.msk.f32.mxu1 %vm4881_vm1, %v4882_v7 }
 0x59d   : > { %4531 = vmatpush3.bf16.msra.mxu0 %v5023_v17 }
 0x59e   : > { %4506 = vmatpush3.bf16.msra.mxu1 %v5023_v17  ;;  %4532 = vmatprep.subr.bf16.mxu0 %v4880_v4 }
 0x59f   : > { %4507 = vmatprep.subr.bf16.mxu1 %v4880_v4 }
 0x5a1   : > { %4534 = vmatpush3.bf16.msra.mxu0 %v5039_v20 }
 0x5a2   : > { %4509 = vmatpush3.bf16.msra.mxu1 %v5039_v20  ;;  %4535 = vmatprep.subr.bf16.mxu0 %v4880_v4 }
 0x5a3   : > { %4510 = vmatprep.subr.bf16.mxu1 %v4880_v4 }
 0x5a5   : > { %4537 = vmatpush3.bf16.msra.mxu0 %v5053_v23 }
 0x5a6   : > { %4512 = vmatpush3.bf16.msra.mxu1 %v5053_v23  ;;  %4538 = vmatprep.subr.bf16.mxu0 %v4880_v4 }
 0x5a7   : > { %4513 = vmatprep.subr.bf16.mxu1 %v4880_v4 }
 0x5a9   : > { %4540 = vmatpush3.bf16.msra.mxu0 %v5068_v27 }
 0x5aa   : > { %4515 = vmatpush3.bf16.msra.mxu1 %v5068_v27  ;;  %4541 = vmatprep.subr.bf16.mxu0 %v4880_v4 }
 0x5ab   : > { %4516 = vmatprep.subr.bf16.mxu1 %v4880_v4 }
 0x5ad   : > { %4543 = vmatpush3.bf16.msra.mxu0 %v5075_v29 }
 0x5ae   : > { %4518 = vmatpush3.bf16.msra.mxu1 %v5075_v29  ;;  %4569 = vmatprep.subr.bf16.mxu0 %v4880_v4 }
 0x5af   : > { %4544 = vmatprep.subr.bf16.mxu1 %v4880_v4 }
 0x663   : > { %v2168_v25 = vpop.f32.mrb[22].mxu0 }
 0x664   : > { %v2169_v26 = vadd.f32 %v5372_v53, %v2168_v25  ;;  %v2017_v28 = vpop.f32.mrb[22].mxu1  ;;  %v4041_v31 = vpop.f32.mrb[23].mxu0  ;;  %v2881_v25 = vld [vmem:[%s4959_s14 + $0x108] sm:$0xff] }
 0x665   : > { %v2018_v32 = vadd.f32 %v5372_v53, %v2017_v28  ;;  %v4003_v33 = vpop.f32.mrb[23].mxu1  ;;  %v4628_v28 = vpack.c.bf16 %v2881_v25, %v2880_v24  ;;  %v2867_v31 = vld [vmem:[%s4959_s14 + $0x98] sm:$0xff]  ;;  %v4614_v25 = vpack.c.bf16 %v2875_v15, %v2874_v13  ;;  %v1112_v13 = vadd.f32 %v5372_v53, %v5259_v18 }
 0x666   : > { %4763 = vtanh.f32 %v2169_v26  ;;  %v2866_v26 = vld [vmem:[%s4959_s14 + $0x90] sm:$0xff]  ;;  %v2899_v33 = vld [vmem:[%s4959_s14 + $0x198] sm:$0xff] }
 0x667   : > { %4765 = vtanh.f32 %v2018_v32  ;;  %v2898_v32 = vld [vmem:[%s4959_s14 + $0x190] sm:$0xff] }
 0x668   : > { %4767 = vtanh.f32 %v4760_v34  ;;  %v4598_v34 = vpack.c.bf16 %v2867_v31, %v2866_v26  ;;  %v2858_v26 = vld [vmem:[%s4959_s14 + $0x50] sm:$0xff] }
 0x66b   : > { %v2396_v35 = vpop.f32.mrb[24].mxu0 }
 0x66c   : > { %v2397_v39 = vadd.f32 %v5086_v30, %v2396_v35  ;;  %v2245_v60 = vpop.f32.mrb[24].mxu1  ;;  %v4090_v40 = vpop.f32.mrb[25].mxu0  ;;  %v4630_v35 = vpack.c.bf16 %v2899_v33, %v2898_v32  ;;  %v2890_v32 = vld [vmem:[%s4959_s14 + $0x150] sm:$0xff]  ;;  %v2891_v33 = vld [vmem:[%s4959_s14 + $0x158] sm:$0xff] }
 0x66d   : > { %v2246_v61 = vadd.f32 %v5086_v30, %v2245_v60  ;;  %v4052_v42 = vpop.f32.mrb[25].mxu1  ;;  %v2851_v60 = vld [vmem:[%s4959_s14 + $0x18] sm:$0xff]  ;;  %v2882_v40 = vld [vmem:[%s4959_s14 + $0x110] sm:$0xff] }
 0x66e   : > { %4769 = vtanh.f32 %v2397_v39  ;;  %v2850_v39 = vld [vmem:[%s4959_s14 + $0x10] sm:$0xff]  ;;  %v2868_v42 = vld [vmem:[%s4959_s14 + $0xa0] sm:$0xff] }
 0x66f   : > { %4771 = vtanh.f32 %v2246_v61  ;;  %v2883_v61 = vld [vmem:[%s4959_s14 + $0x118] sm:$0xff] }
 0x670   : > { %v4764_v43 = vpop.eup %4763  ;;  %4773 = vtanh.f32 %v4762_v41  ;;  %v4600_v41 = vpack.c.bf16 %v2851_v60, %v2850_v39  ;;  %v4648_v60 = vpack.c.bf16 %v2891_v33, %v2890_v32 }
 0x671   : > { %v4766_v44 = vpop.eup %4765  ;;  %4775 = vtanh.f32 %v4764_v43  ;;  %v2869_v43 = vld [vmem:[%s4959_s14 + $0xa8] sm:$0xff] }
 0x672   : > { %4777 = vtanh.f32 %v4766_v44  ;;  %v5440_v45 = vpop.eup %4767  ;;  %v4632_v44 = vpack.c.bf16 %v2883_v61, %v2882_v40  ;;  %v1414_v61 = vadd.f32 %v5372_v53, %v5315_v37  ;;  %v2877_v37 = vld [vmem:[%s4959_s14 + $0xe8] sm:$0xff] }
 0x678   : > { %v4770_v48 = vpop.eup %4769 }
 0x679   : > { %v4772_v49 = vpop.eup %4771  ;;  %4116 = vmatmul.mubr.msk.f32.vlgmr.msra.gmra.mrb[26].mxu0 %vm437_vm6, %v4770_v48  ;;  %v4602_v48 = vpack.c.bf16 %v2869_v43, %v2868_v42 }
 0x67a   : > { %v4774_v50 = vpop.eup %4773  ;;  %4571 = vmatpush3.bf16.msra.mxu0 %v4975_v5  ;;  %4078 = vmatmul.mubr.msk.f32.vlgmr.msra.gmra.mrb[26].mxu1 %vm437_vm6, %v4772_v49  ;;  %v2900_v49 = vld [vmem:[%s4959_s14 + $0x1a0] sm:$0xff] }
 0x67b   : > { %v5445_v51 = vpop.eup %4775  ;;  %4546 = vmatpush3.bf16.msra.mxu1 %v4975_v5  ;;  %4572 = vmatprep.subr.bf16.mxu0 %v4880_v4  ;;  %v3216_v5 = vld [vmem:[%s4954_s11 + $0x78] sm:$0xff]  ;;  %s2705_s11 = scalar_select %p2704_p6, 1, 0 }
 0x67c   : > { %v4778_v52 = vpop.eup %4777  ;;  %4547 = vmatprep.subr.bf16.mxu1 %v4880_v4  ;;  %4164 = vmatprep.mubr.msk.f32.mxu0 %vm4881_vm1, %v4882_v7  ;;  %v4722_v54 = vpack.i.bf16 %v5445_v51, %v5440_v45 }
 0x67d   : > { %v4702_v55 = vpack.i.bf16 %v4778_v52, %v4774_v50  ;;  %4126 = vmatprep.mubr.msk.f32.mxu1 %vm4881_vm1, %v4882_v7  ;;  %s2706_s23 = scvt.s32.f32 %s2705_s11  ;;  %v2901_v50 = vld [vmem:[%s4959_s14 + $0x1a8] sm:$0xff]  ;;  %v2852_v52 = vld [vmem:[%s4959_s14 + $0x20] sm:$0xff] }
 0x67e   : > { %4575 = vmatpush3.bf16.msk.msra.mxu0 %vm4991_vm3, %v4986_v8 }
 0x67f   : > { %4550 = vmatpush3.bf16.msk.msra.mxu1 %vm4991_vm3, %v4986_v8  ;;  %4703 = vrot.lane.b32.xlu1 %v4702_v55, %s4885_s22  ;;  %v2707_v63 = vstv %s2706_s23  ;;  %v4634_v55 = vpack.c.bf16 %v2901_v50, %v2900_v49 }
 0x680   : > { %4551 = vmatprep.subr.bf16.mxu1 %v4880_v4  ;;  %4576 = vmatprep.subr.bf16.mxu0 %v4880_v4  ;;  %v2708_v0 = vsel %vm2703_vm7, %v2707_v63, 1.0  ;;  %v2872_v63 = vld [vmem:[%s4959_s14 + $0xc0] sm:$0xff] }
 0x681   : > { %4165 = vmatmul.mubr.msk.f32.vlgmr.msra.gmra.mrb[28].mxu0 %vm343_vm4, %v3216_v5  ;;  %v2853_v5 = vld [vmem:[%s4959_s14 + $0x28] sm:$0xff] }
 0x682   : > { %4127 = vmatmul.mubr.msk.f32.vlgmr.msra.gmra.mrb[28].mxu1 %vm343_vm4, %v3212_v56  ;;  %4578 = vmatpush3.bf16.msra.mxu0 %v5009_v14  ;;  %v2884_v56 = vld [vmem:[%s4959_s14 + $0x120] sm:$0xff] }
 0x683   : > { %4553 = vmatpush3.bf16.msra.mxu1 %v5009_v14  ;;  %4579 = vmatprep.subr.bf16.mxu0 %v4880_v4 }
 0x684   : > { %4554 = vmatprep.subr.bf16.mxu1 %v4880_v4  ;;  %4153 = vmatprep.mubr.msk.f32.mxu1 %vm4881_vm1, %v4882_v7 }
 0x685   : > { %4191 = vmatprep.mubr.msk.f32.mxu0 %vm4881_vm1, %v4882_v7  ;;  %v1263_v7 = vadd.f32 %v5372_v53, %v5257_v16 }
 0x686   : > { %4581 = vmatpush3.bf16.msra.mxu0 %v5023_v17 }
 0x687   : > { %4556 = vmatpush3.bf16.msra.mxu1 %v5023_v17  ;;  %4582 = vmatprep.subr.bf16.mxu0 %v4880_v4  ;;  %4779 = vtanh.f32 %v1263_v7  ;;  %v2885_v7 = vld [vmem:[%s4959_s14 + $0x128] sm:$0xff] }
 0x688   : > { %4557 = vmatprep.subr.bf16.mxu1 %v4880_v4 }
 0x68a   : > { %4584 = vmatpush3.bf16.msra.mxu0 %v5039_v20 }
 0x68b   : > { %4559 = vmatpush3.bf16.msra.mxu1 %v5039_v20  ;;  %4585 = vmatprep.subr.bf16.mxu0 %v4880_v4 }
 0x68c   : > { %4560 = vmatprep.subr.bf16.mxu1 %v4880_v4 }
 0x68e   : > { %4587 = vmatpush3.bf16.msra.mxu0 %v5053_v23 }
 0x68f   : > { %4562 = vmatpush3.bf16.msra.mxu1 %v5053_v23  ;;  %4588 = vmatprep.subr.bf16.mxu0 %v4880_v4 }
 0x690   : > { %4563 = vmatprep.subr.bf16.mxu1 %v4880_v4 }
 0x691   : > { %v4780_v58 = vpop.eup %4779 }
 0x692   : > { %4590 = vmatpush3.bf16.msra.mxu0 %v5068_v27 }
 0x693   : > { %4565 = vmatpush3.bf16.msra.mxu1 %v5068_v27  ;;  %4591 = vmatprep.subr.bf16.mxu0 %v4880_v4 }
 0x694   : > { %4566 = vmatprep.subr.bf16.mxu1 %v4880_v4 }
 0x696   : > { %4593 = vmatpush3.bf16.msra.mxu0 %v5075_v29 }
 0x697   : > { %4568 = vmatpush3.bf16.msra.mxu1 %v5075_v29  ;;  %4627 = vmatprep.subr.bf16.mxu0 %v4626_v21  ;;  %v2907_v21 = vld [vmem:[%s4959_s14 + $0x1d8] sm:$0xff] }
 0x698   : > { %4595 = vmatprep.subr.bf16.mxu1 %v4594_v12  ;;  %v2889_v12 = vld [vmem:[%s4959_s14 + $0x148] sm:$0xff]  ;;  %v4646_v31 = vpack.c.bf16 %v2907_v21, %v2906_v19  ;;  %v508_v19 = vadd.f32 %v5372_v53, %v5147_v47  ;;  %v1716_v21 = vadd.f32 %v5372_v53, %v5377_v57 }
 0x699   : > { %v4644_v24 = vpack.c.bf16 %v2889_v12, %v2888_v10 }
 0x74c   : > { %v2470_v8 = vpop.f32.mrb[26].mxu0 }
 0x74d   : > { %v2471_v9 = vadd.f32 %v5372_v53, %v2470_v8  ;;  %v5498_v14 = vpop.f32.mrb[26].mxu1  ;;  %v4117_v17 = vpop.f32.mrb[27].mxu0  ;;  %v4604_v8 = vpack.c.bf16 %v2853_v5, %v2852_v52 }
 0x74e   : > { %v4079_v20 = vpop.f32.mrb[27].mxu1  ;;  %v2871_v17 = vld [vmem:[%s4959_s14 + $0xb8] sm:$0xff]  ;;  %v2320_v15 = vadd.f32 %v5372_v53, %v5498_v14  ;;  %v4704_v14 = vpop.permute.xlu1 %4703 }
 0x74f   : > { %4781 = vtanh.f32 %v2471_v9  ;;  %v2870_v9 = vld [vmem:[%s4959_s14 + $0xb0] sm:$0xff]  ;;  %v4706_v32 = vunpack.i.h.bf16 %v4704_v14  ;;  %v4705_v33 = vunpack.i.l.bf16 %v4704_v14 }
 0x750   : > { %v2902_v20 = vld [vmem:[%s4959_s14 + $0x1b0] sm:$0xff] }
 0x754   : > { %v2698_v23 = vpop.f32.mrb[28].mxu0 }
 0x755   : > { %v2699_v4 = vadd.f32 %v5086_v30, %v2698_v23  ;;  %v2547_v27 = vpop.f32.mrb[28].mxu1  ;;  %v4166_v29 = vpop.f32.mrb[29].mxu0  ;;  %v4636_v23 = vpack.c.bf16 %v2885_v7, %v2884_v56  ;;  %v2860_v56 = vld [vmem:[%s4959_s14 + $0x60] sm:$0xff]  ;;  %v2861_v7 = vld [vmem:[%s4959_s14 + $0x68] sm:$0xff] }
 0x756   : > { %v2548_v16 = vadd.f32 %v5086_v30, %v2547_v27  ;;  %v4128_v59 = vpop.f32.mrb[29].mxu1  ;;  %v2903_v27 = vld [vmem:[%s4959_s14 + $0x1b8] sm:$0xff]  ;;  %v2854_v29 = vld [vmem:[%s4959_s14 + $0x30] sm:$0xff] }
 0x757   : > { %4783 = vtanh.f32 %v2699_v4  ;;  %v4606_v4 = vpack.c.bf16 %v2871_v17, %v2870_v9  ;;  %v2886_v59 = vld [vmem:[%s4959_s14 + $0x130] sm:$0xff]  ;;  %v4620_v17 = vpack.c.bf16 %v2861_v7, %v2860_v56 }
 0x758   : > { %4785 = vtanh.f32 %v2548_v16  ;;  %v4638_v16 = vpack.c.bf16 %v2903_v27, %v2902_v20  ;;  %v2893_v20 = vld [vmem:[%s4959_s14 + $0x168] sm:$0xff]  ;;  %v2878_v27 = vld [vmem:[%s4959_s14 + $0xf0] sm:$0xff] }
 0x759   : > { %v4782_v62 = vpop.eup %4781  ;;  %4787 = vtanh.f32 %v4780_v58  ;;  %v2855_v58 = vld [vmem:[%s4959_s14 + $0x38] sm:$0xff] }
 0x75a   : > { %4789 = vtanh.f32 %v4782_v62  ;;  %v2887_v62 = vld [vmem:[%s4959_s14 + $0x138] sm:$0xff] }
 0x761   : > { %v4784_v1 = vpop.eup %4783 }
 0x762   : > { %v4786_v2 = vpop.eup %4785  ;;  %v2709_v30 = vmul.f32 %v4784_v1, %v2708_v0  ;;  %v2873_v0 = vld [vmem:[%s4959_s14 + $0xc8] sm:$0xff]  ;;  %v2904_v1 = vld [vmem:[%s4959_s14 + $0x1c0] sm:$0xff] }
 0x763   : > { %v4788_v3 = vpop.eup %4787  ;;  %4154 = vmatmul.mubr.msk.f32.vlgmr.msra.gmra.mrb[30].mxu1 %vm437_vm6, %v4786_v2  ;;  %v2905_v2 = vld [vmem:[%s4959_s14 + $0x1c8] sm:$0xff] }
 0x764   : > { %v4790_v6 = vpop.eup %4789  ;;  %4192 = vmatmul.mubr.msk.f32.vlgmr.msra.gmra.mrb[30].mxu0 %vm437_vm6, %v2709_v30  ;;  %4597 = vmatpush3.bf16.msra.mxu1 %v4596_v22  ;;  %v4608_v30 = vpack.c.bf16 %v2855_v58, %v2854_v29  ;;  %v4642_v11 = vpack.c.bf16 %v2905_v2, %v2904_v1  ;;  %v2879_v29 = vld [vmem:[%s4959_s14 + $0xf8] sm:$0xff]  ;;  %v2910_v58 = vld [vmem:[%s4959_s14 + $0x1f0] sm:$0xff] }
 0x765   : > { %v4707_v46 = vpack.i.bf16 %v4790_v6, %v4788_v3  ;;  %4629 = vmatpush3.bf16.msra.mxu0 %v4628_v28  ;;  %4599 = vmatprep.subr.bf16.mxu1 %v4598_v34  ;;  %v4640_v3 = vpack.c.bf16 %v2887_v62, %v2886_v59  ;;  %v4610_v6 = vpack.c.bf16 %v2873_v0, %v2872_v63  ;;  %v2859_v28 = vld [vmem:[%s4959_s14 + $0x58] sm:$0xff]  ;;  %v2908_v34 = vld [vmem:[%s4959_s14 + $0x1e0] sm:$0xff]  ;;  %v2862_v62 = vld [vmem:[%s4959_s14 + $0x70] sm:$0xff] }
 0x766   : > { %4631 = vmatprep.subr.bf16.mxu0 %v4630_v35  ;;  %v2909_v35 = vld [vmem:[%s4959_s14 + $0x1e8] sm:$0xff]  ;;  %v4616_v39 = vpack.c.bf16 %v2859_v28, %v2858_v26  ;;  %v2911_v59 = vld [vmem:[%s4959_s14 + $0x1f8] sm:$0xff]  ;;  %v2894_v2 = vld [vmem:[%s4959_s14 + $0x170] sm:$0xff] }
 0x767   : > { %4708 = vrot.lane.b32.xlu0 %v4707_v46, %s4884_s21  ;;  %v2856_v46 = vld [vmem:[%s4959_s14 + $0x40] sm:$0xff]  ;;  %v4650_v40 = vpack.c.bf16 %v2909_v35, %v2908_v34  ;;  %v2863_v63 = vld [vmem:[%s4959_s14 + $0x78] sm:$0xff]  ;;  %v4654_v0 = vpack.c.bf16 %v2911_v59, %v2910_v58 }
 0x768   : > { %4601 = vmatpush3.bf16.msra.mxu1 %v4600_v41  ;;  %v4612_v22 = vpack.c.bf16 %v2857_v38, %v2856_v46  ;;  %v1565_v41 = vadd.f32 %v5372_v53, %v5313_v36  ;;  %v4624_v1 = vpack.c.bf16 %v2863_v63, %v2862_v62  ;;  %v2847_v58 = vld [vmem:[#allocation2] sm:$0xff] }
 0x769   : > { %4633 = vmatpush3.bf16.msra.mxu0 %v4632_v44  ;;  %4603 = vmatprep.subr.bf16.mxu1 %v4602_v48  ;;  %v3221_v63 = vld [vmem:[%s5651_s6] ss:$0 sm:$0xff] (!%p2704_p6) }
 0x76a   : > { %4635 = vmatprep.subr.bf16.mxu0 %v4634_v55  ;;  %4791 = vtanh.f32 %v1565_v41  ;;  %v2876_v55 = vld [vmem:[%s4959_s14 + $0xe0] sm:$0xff] }
 0x76b   : > { %4793 = vtanh.f32 %v1414_v61  ;;  %v4618_v5 = vpack.c.bf16 %v2877_v37, %v2876_v55 }
 0x76c   : > { %4605 = vmatpush3.bf16.msra.mxu1 %v4604_v8  ;;  %v2892_v8 = vld [vmem:[%s4959_s14 + $0x160] sm:$0xff] }
 0x76d   : > { %4637 = vmatpush3.bf16.msra.mxu0 %v4636_v23  ;;  %4607 = vmatprep.subr.bf16.mxu1 %v4606_v4  ;;  %v4652_v4 = vpack.c.bf16 %v2893_v20, %v2892_v8 }
 0x76e   : > { %4639 = vmatprep.subr.bf16.mxu0 %v4638_v16  ;;  %v4622_v16 = vpack.c.bf16 %v2879_v29, %v2878_v27 }
 0x770   : > { %4609 = vmatpush3.bf16.msra.mxu1 %v4608_v30  ;;  %v2895_v30 = vld [vmem:[%s4959_s14 + $0x178] sm:$0xff] }
 0x771   : > { %4641 = vmatpush3.bf16.msra.mxu0 %v4640_v3  ;;  %4611 = vmatprep.subr.bf16.mxu1 %v4610_v6  ;;  %v4656_v3 = vpack.c.bf16 %v2895_v30, %v2894_v2 }
 0x772   : > { %4643 = vmatprep.subr.bf16.mxu0 %v4642_v11 }
 0x774   : > { %4613 = vmatpush3.bf16.msra.mxu1 %v4612_v22  ;;  %v4792_v36 = vpop.eup %4791 }
 0x775   : > { %4645 = vmatpush3.bf16.msra.mxu0 %v4644_v24  ;;  %4615 = vmatprep.subr.bf16.mxu1 %v4614_v25  ;;  %v4794_v52 = vpop.eup %4793 }
 0x776   : > { %4647 = vmatprep.subr.bf16.mxu0 %v4646_v31 }
 0x778   : > { %4617 = vmatpush3.bf16.msra.mxu1 %v4616_v39 }
 0x779   : > { %4649 = vmatpush3.bf16.msra.mxu0 %v4648_v60  ;;  %4619 = vmatprep.subr.bf16.mxu1 %v4618_v5 }
 0x77a   : > { %4651 = vmatprep.subr.bf16.mxu0 %v4650_v40 }
 0x77c   : > { %4621 = vmatpush3.bf16.msra.mxu1 %v4620_v17 }
 0x77d   : > { %4653 = vmatpush3.bf16.msra.mxu0 %v4652_v4  ;;  %4623 = vmatprep.subr.bf16.mxu1 %v4622_v16 }
 0x77e   : > { %4655 = vmatprep.subr.bf16.mxu0 %v4654_v0 }
 0x780   : > { %4625 = vmatpush3.bf16.msra.mxu1 %v4624_v1 }
 0x781   : > { %4657 = vmatpush3.bf16.msra.mxu0 %v4656_v3 }
 0x836   : > { %v2621_v42 = vpop.f32.mrb[30].mxu1 }
 0x837   : > { %v2622_v43 = vadd.f32 %v5372_v53, %v2621_v42  ;;  %v2779_v44 = vpop.f32.mrb[30].mxu0  ;;  %v4155_v48 = vpop.f32.mrb[31].mxu1 }
 0x838   : > { %v2780_v49 = vadd.f32 %v5372_v53, %v2779_v44  ;;  %v4193_v50 = vpop.f32.mrb[31].mxu0 }
 0x839   : > { %4795 = vtanh.f32 %v2622_v43 }
 0x83a   : > { %4797 = vtanh.f32 %v2780_v49 }
 0x83b   : > { %4799 = vtanh.f32 %v4792_v36 }
 0x83c   : > { %4801 = vtanh.f32 %v4794_v52 }
 0x843   : > { %v4796_v9 = vpop.eup %4795 }
 0x844   : > { %v4798_v23 = vpop.eup %4797  ;;  %4803 = vtanh.f32 %v4796_v9 }
 0x845   : > { %4805 = vtanh.f32 %v4798_v23  ;;  %v4800_v6 = vpop.eup %4799 }
 0x846   : > { %v4802_v46 = vpop.eup %4801  ;;  %4807 = vtanh.f32 %v1112_v13 }
 0x847   : > { %4809 = vtanh.f32 %v2320_v15 }
 0x848   : > { %4811 = vtanh.f32 %v508_v19 }
 0x849   : > { %4813 = vtanh.f32 %v1716_v21 }
 0x84e   : > { %v4804_v38 = vpop.eup %4803 }
 0x84f   : > { %v4806_v10 = vpop.eup %4805  ;;  %v4712_v11 = vpack.i.bf16 %v4804_v38, %v4802_v46 }
 0x850   : > { %v4717_v12 = vpack.i.bf16 %v4806_v10, %v4800_v6  ;;  %v4808_v22 = vpop.eup %4807 }
 0x851   : > { %4713 = vrot.lane.b32.xlu1 %v4712_v11, %s4885_s22  ;;  %v4810_v24 = vpop.eup %4809  ;;  %4815 = vtanh.f32 %v4808_v22 }
 0x852   : > { %4718 = vrot.lane.b32.xlu0 %v4717_v12, %s4886_s29  ;;  %v4812_v45 = vpop.eup %4811  ;;  %4817 = vtanh.f32 %v4810_v24 }
 0x853   : > { %v4814_v51 = vpop.eup %4813  ;;  %4819 = vtanh.f32 %v4812_v45 }
 0x854   : > { %4821 = vtanh.f32 %v4814_v51 }
 0x855   : > { %4723 = vrot.lane.b32.xlu1 %v4722_v54, %s4886_s29  ;;  %v4699_v54 = vpop.permute.xlu0 %4698 }
 0x856   : > { %v4701_v28 = vunpack.i.h.bf16 %v4699_v54  ;;  %v4700_v53 = vunpack.i.l.bf16 %v4699_v54 }
 0x859   : > { %v4709_v18 = vpop.permute.xlu0 %4708 }
 0x85a   : > { %v4711_v25 = vunpack.i.h.bf16 %v4709_v18  ;;  %v4710_v47 = vunpack.i.l.bf16 %v4709_v18 }
 0x85b   : > { %v4816_v26 = vpop.eup %4815 }
 0x85c   : > { %v4818_v31 = vpop.eup %4817  ;;  %v2838_v41 = vsel %vm2833_vm8, %v4816_v26, %v4710_v47 }
 0x85d   : > { %v2844_v61 = vsel %vm2833_vm8, %v4818_v31, %v4711_v25  ;;  %v4820_v42 = vpop.eup %4819 }
 0x85e   : > { %v4822_v48 = vpop.eup %4821  ;;  %v2834_v52 = vsel %vm2833_vm8, %v4820_v42, %v4700_v53 }
 0x85f   : > { %v2841_v55 = vsel %vm2833_vm8, %v4822_v48, %v4701_v28  ;;  %v2836_v56 = vsel %vm2835_vm9, %v2834_v52, %v4705_v33 }
 0x860   : > { %v2842_v7 = vsel %vm2835_vm9, %v2841_v55, %v4706_v32 }
 0x8c3   : > { %v4714_v57 = vpop.permute.xlu1 %4713 }
 0x8c4   : > { %v4719_v34 = vpop.permute.xlu0 %4718  ;;  %v4716_v35 = vunpack.i.h.bf16 %v4714_v57  ;;  %v4715_v39 = vunpack.i.l.bf16 %v4714_v57 }
 0x8c5   : > { %v4721_v60 = vunpack.i.h.bf16 %v4719_v34  ;;  %v4720_v40 = vunpack.i.l.bf16 %v4719_v34 }
 0x8c6   : > { %v2839_v43 = vsel %vm2835_vm9, %v2838_v41, %v4715_v39  ;;  %v2845_v44 = vsel %vm2835_vm9, %v2844_v61, %v4716_v35 }
 0x8c7   : > { %v4724_v49 = vpop.permute.xlu1 %4723  ;;  %v2840_v50 = vsel %vm437_vm6, %v2839_v43, %v4720_v40  ;;  %v2846_v36 = vsel %vm437_vm6, %v2845_v44, %v4721_v60 }
 0x8c8   : > { %v4726_v37 = vunpack.i.h.bf16 %v4724_v49  ;;  %v4725_v5 = vunpack.i.l.bf16 %v4724_v49  ;;  %2976 = vmatprep.mubr.f32.mxu1 %v2840_v50  ;;  %3046 = vmatprep.mubr.f32.mxu0 %v2846_v36 }
 0x8ca   : > { %v2837_v8 = vsel %vm437_vm6, %v2836_v56, %v4725_v5  ;;  %v2843_v9 = vsel %vm437_vm6, %v2842_v7, %v4726_v37 }
 0x8cb   : > { %2977 = vmatmul.mubr.f32.vlgmr.msra.gmra.mrb[32].mxu1 %v2837_v8  ;;  %3047 = vmatmul.mubr.f32.vlgmr.msra.gmra.mrb[32].mxu0 %v2843_v9 }
 0x99e   : > { %v3548_v17 = vpop.f32.mrb[32].mxu1  ;;  %v3583_v20 = vpop.f32.mrb[32].mxu0 }
 0x99f   : > { %v3549_v23 = vpop.f32.mrb[33].mxu1  ;;  %v3584_v4 = vpop.f32.mrb[33].mxu0 }
 0x9a0   : > { %v3550_v27 = vadd.f32 %v3549_v23, %v3548_v17  ;;  %v3585_v29 = vadd.f32 %v3584_v4, %v3583_v20  ;;  %3057 = sbr.rel (%p2704_p6) target bundleno = 2492 (0x9bc), region = 56 }
 0x9a2   : > { %v3049_v16 = vadd.f32 %v3585_v29, %v3550_v27 }
 0x9a4   : > { %v3052_v59 = vadd.f32 %v3049_v16, %v2847_v58 }
 0x9a6   : > { %3053 = vst [vmem:[#allocation2] sm:$0xff] %v3052_v59 }
 0x9ad   : > { %v3058_v62 = vld [vmem:[#allocation2] sm:$0xff] }
 0x9ae   : > { %v3066_v0 = vadd.f32 %v3221_v63, %v3058_v62 }
 0x9b0   : > { %4823 = vtanh.f32 %v3066_v0 }
 0x9ba   : > { %v4824_v1 = vpop.eup %4823 }
 0x9bb   : > { %3068 = vst [vmem:[#allocation2] sm:$0xff] %v4824_v1 }
 0x9bc PF: > { %p5610_p7 = scmp.eq.s32.totalorder %s3146_s27, 3  ;;  %s4887_s9 = smov [#allocation2]  }
 0x9bd   : > { %s3078_s24 = sshll.u32 %s4887_s9, 4  ;;  %s3079_s24 = int_to_ptr.vmem [resolvable:$true] %s3078_s24 }
 0x9be   : > { %s4825_s10 = scalar_lea.vmem %s3079_s24, 128  ;;  %p4832_p11 = scmp.lt.s32.totalorder %s3079_s24, %s3079_s24 }
 0x9bf   : > { %p4826_p8 = scmp.ne.s32.totalorder %s3079_s24, %s4825_s10  ;;  %p4833_p12 = scmp.lt.s32.totalorder %s4825_s10, %s4825_s10 }
 0x9c1   : > { %p4827_p9 = pnand %p4826_p8, %p5610_p7  ;;  %p4834_p13 = por %p4833_p12, %p4832_p11 }
 0x9c3   : > { %p4828_p10 = pneg %p4827_p9 }
 0x9c5   : > { %p4835_p0 = pnand %p4834_p13, %p4828_p10 }
 0x9c7   : > { %4838 = shalt.err (!%p4835_p0)
}
 0x9c8   : > { %s4839_s27 = scalar_lea.hbm %s5652_s7, 128 }
 0x9c9   : > { %p4840_p1 = scmp.ne.s32.totalorder %s5652_s7, %s4839_s27  ;;  %p4845_p4 = scmp.lt.u32.totalorder %s4839_s27, %s5652_s7 }
 0x9cb   : > { %p4841_p2 = pnand %p4840_p1, %p5610_p7 }
 0x9cd   : > { %p4842_p3 = pneg %p4841_p2 }
 0x9cf   : > { %p4847_p5 = pnand %p4845_p4, %p4842_p3 }
 0x9d1   : > { %4850 = shalt.err (!%p4847_p5)
}
 0x9d2   : > { %4659 = dma.vmem_to_hbm [thread:$0]  (%p5610_p7), %s3079_s24, 128, %s5652_s7, [#allocation3]  }
 0x9d3   : > { %4864 = dma.done.wait (%p5610_p7), [#allocation3], 128  }
 0x9d4   : > { %4866 = vsyncadd (%p5610_p7), [#allocation3], 4294967168 }
 0x9d5 PF: > { %s18_s26 = sadd.s32 1, %s4877_s26   ;;  %s5656_s24 = smov %s4873_s25 }
 0x9d6   : > { %p15_p6 = scmp.ge.s32.totalorder %s18_s26, 6   ;;  %s5657_s25 = smov %s5659_s28 }
 0x9d8   :  { %17 = sbr.rel (!%p15_p6) target bundleno = 2 (0x2), region = 102 }
 0x9df   :  { %3091 = vsyncpa [#allocation3], 1 }
 0x9e0   :  { %3093 = vsyncpa [#allocation3 + $0x1], 1 }

</bundles_post_ra>
